<compile_context>
chip_gen: v5e
topology: v5e:2x2
jax: 0.10.0
libtpu: 0.0.40
codegen_flags: <defaults>
</compile_context>

<pallas_src>
import functools

import jax
import jax.numpy as jnp
from jax import lax
from jax.experimental import pallas as pl
from jax.experimental.pallas import tpu as pltpu


# ----------------------------------------------------------------------------
# Host-side (weight-only) operator construction
# ----------------------------------------------------------------------------
def _conv_banded_operator(w, w_in):
    """w: [OC, IC, KH, KW] (PyTorch OIHW) -> B: [KH, w_in*IC, OW*OC].

    With channels-last row slabs X[h, w*IC + ic], a VALID stride-1 conv is
        out[oh, ow*OC + oc] = sum_i ( X[oh + i, :] @ B[i] )[ow*OC + oc].
    """
    OC, IC, KH, KW = w.shape
    OW = w_in - KW + 1
    s = jnp.arange(w_in)                         # input column
    ow = jnp.arange(OW)                          # output column
    j = s[:, None] - ow[None, :]                 # kernel tap column, [w_in, OW]
    valid = (j >= 0) & (j < KW)
    jc = jnp.clip(j, 0, KW - 1)
    w_t = jnp.transpose(w, (2, 3, 1, 0))         # [KH, KW, IC, OC]
    B = w_t[:, jc]                               # [KH, w_in, OW, IC, OC]
    B = jnp.where(valid[None, :, :, None, None], B, 0.0)
    B = jnp.transpose(B, (0, 1, 3, 2, 4))        # [KH, w_in, IC, OW, OC]
    return B.reshape(KH, w_in * IC, OW * OC).astype(jnp.float32)


def _pool_row_matrix(oh):
    """[oh//2, oh] matrix with 0.5 at (p, 2p) and (p, 2p+1)."""
    rows = jnp.arange(oh // 2)[:, None]
    cols = jnp.arange(oh)[None, :]
    return 0.5 * (cols // 2 == rows).astype(jnp.float32)


def _pool_col_matrix(ow, oc):
    """[ow*oc, (ow//2)*oc] matrix pooling the W axis of a channels-last row."""
    src = jnp.arange(ow * oc)
    dst = jnp.arange((ow // 2) * oc)
    sw, sc = src // oc, src % oc
    dw, dc = dst // oc, dst % oc
    return 0.5 * ((sw[:, None] // 2 == dw[None, :]) &
                  (sc[:, None] == dc[None, :])).astype(jnp.float32)


# ----------------------------------------------------------------------------
# Fused Pallas kernel: one image per grid step, everything stays on chip
# ----------------------------------------------------------------------------
def _lenet_kernel(x_ref, b1_ref, bias1_ref, ph1_ref, qw1_ref,
                  b2_ref, bias2_ref, ph2_ref, qw2_ref,
                  b3_ref, bias3_ref,
                  wfc1_ref, bfc1_ref, wfc2_ref, bfc2_ref,
                  o_ref, p1_ref, p2_ref):
    dot = functools.partial(jnp.dot, preferred_element_type=jnp.float32)

    # conv1 + ReLU: x [32, 32] (C=1) -> [28, 28*6]
    acc = dot(x_ref[0, 0:28, :], b1_ref[0])
    for i in range(1, 5):
        acc += dot(x_ref[0, i:i + 28, :], b1_ref[i])
    a1 = jnp.maximum(acc + bias1_ref[...], 0.0)

    # 2x2 avg pool: [28, 168] -> [14, 84]    (two MXU matmuls)
    p1_ref[...] = dot(dot(ph1_ref[...], a1), qw1_ref[...])

    # conv2 + ReLU: [14, 14*6] -> [10, 10*16]
    acc = dot(p1_ref[0:10, :], b2_ref[0])
    for i in range(1, 5):
        acc += dot(p1_ref[i:i + 10, :], b2_ref[i])
    a2 = jnp.maximum(acc + bias2_ref[...], 0.0)

    # 2x2 avg pool: [10, 160] -> [5, 80]
    p2_ref[...] = dot(dot(ph2_ref[...], a2), qw2_ref[...])

    # conv3 + ReLU: [5, 5*16] -> [1, 120]  (this is already the flattened vec)
    acc = dot(p2_ref[0:1, :], b3_ref[0])
    for i in range(1, 5):
        acc += dot(p2_ref[i:i + 1, :], b3_ref[i])
    a3 = jnp.maximum(acc + bias3_ref[...], 0.0)

    # linear1 + ReLU: [1, 120] -> [1, 84]
    h = jnp.maximum(dot(a3, wfc1_ref[...]) + bfc1_ref[...], 0.0)

    # linear2 (output padded to 128 lanes for a full-width store): [1, 128]
    o_ref[0] = dot(h, wfc2_ref[...]) + bfc2_ref[...]


# ----------------------------------------------------------------------------
# Wrapper
# ----------------------------------------------------------------------------
@jax.jit
def lenet_forward(x, p):
    """x: [N, 1, 32, 32] float32, p: PyTorch-layout params -> logits [N, 10]."""
    N, C, H, W = x.shape
    assert (C, H, W) == (1, 32, 32), (C, H, W)
    x2d = x.reshape(N, 32, 32)                       # C == 1, channels-last rows

    # Weight-derived operator matrices (built once, resident in VMEM).
    B1 = _conv_banded_operator(p["conv1_w"], 32)     # [5, 32, 168]
    B2 = _conv_banded_operator(p["conv2_w"], 14)     # [5, 84, 160]
    B3 = _conv_banded_operator(p["conv3_w"], 5)      # [5, 80, 120]
    bias1 = jnp.tile(p["conv1_b"], 28)[None, :]      # [1, 168]
    bias2 = jnp.tile(p["conv2_b"], 10)[None, :]      # [1, 160]
    bias3 = p["conv3_b"][None, :]                    # [1, 120]
    ph1 = _pool_row_matrix(28)                       # [14, 28]
    qw1 = _pool_col_matrix(28, 6)                    # [168, 84]
    ph2 = _pool_row_matrix(10)                       # [5, 10]
    qw2 = _pool_col_matrix(10, 16)                   # [160, 80]
    wfc1 = p["lin1_w"].T                             # [120, 84]
    bfc1 = p["lin1_b"][None, :]                      # [1, 84]
    wfc2 = jnp.zeros((84, 128), jnp.float32).at[:, :10].set(p["lin2_w"].T)
    bfc2 = jnp.zeros((1, 128), jnp.float32).at[:, :10].set(p["lin2_b"][None, :])

    const2 = lambda n: (0, 0)
    const3 = lambda n: (0, 0, 0)
    out = pl.pallas_call(
        _lenet_kernel,
        out_shape=jax.ShapeDtypeStruct((N, 1, 128), jnp.float32),
        grid=(N,),
        in_specs=[
            pl.BlockSpec((1, 32, 32), lambda n: (n, 0, 0)),   # x (per image)
            pl.BlockSpec((5, 32, 168), const3),               # conv1 operator
            pl.BlockSpec((1, 168), const2),                   # conv1 bias row
            pl.BlockSpec((14, 28), const2),                   # pool1 rows
            pl.BlockSpec((168, 84), const2),                  # pool1 cols
            pl.BlockSpec((5, 84, 160), const3),               # conv2 operator
            pl.BlockSpec((1, 160), const2),                   # conv2 bias row
            pl.BlockSpec((5, 10), const2),                    # pool2 rows
            pl.BlockSpec((160, 80), const2),                  # pool2 cols
            pl.BlockSpec((5, 80, 120), const3),               # conv3 operator
            pl.BlockSpec((1, 120), const2),                   # conv3 bias row
            pl.BlockSpec((120, 84), const2),                  # linear1 weight
            pl.BlockSpec((1, 84), const2),                    # linear1 bias
            pl.BlockSpec((84, 128), const2),                  # linear2 weight (padded)
            pl.BlockSpec((1, 128), const2),                   # linear2 bias (padded)
        ],
        out_specs=pl.BlockSpec((1, 1, 128), lambda n: (n, 0, 0)),
        scratch_shapes=[
            pltpu.VMEM((14, 84), jnp.float32),                # pooled conv1 act
            pltpu.VMEM((5, 80), jnp.float32),                 # pooled conv2 act
        ],
        compiler_params=pltpu.CompilerParams(
            dimension_semantics=("parallel",)),
    )(x2d, B1, bias1, ph1, qw1, B2, bias2, ph2, qw2, B3, bias3,
      wfc1, bfc1, wfc2, bfc2)
    return out[:, 0, :10]


# ----------------------------------------------------------------------------
# Pure-JAX reference (matches the PyTorch module)
# ----------------------------------------------------------------------------
def lenet_reference(x, p):
    def conv(x, w, b):
        y = lax.conv_general_dilated(
            x, w, window_strides=(1, 1), padding="VALID",
            dimension_numbers=("NCHW", "OIHW", "NCHW"),
            precision=lax.Precision.HIGHEST)
        return jax.nn.relu(y + b[None, :, None, None])

    def pool(x):
        N, C, H, W = x.shape
        return x.reshape(N, C, H // 2, 2, W // 2, 2).mean(axis=(3, 5))

    x = pool(conv(x, p["conv1_w"], p["conv1_b"]))
    x = pool(conv(x, p["conv2_w"], p["conv2_b"]))
    x = conv(x, p["conv3_w"], p["conv3_b"])
    x = x.reshape(x.shape[0], -1)
    x = jax.nn.relu(
        jnp.dot(x, p["lin1_w"].T, precision=lax.Precision.HIGHEST) + p["lin1_b"])
    x = jnp.dot(x, p["lin2_w"].T, precision=lax.Precision.HIGHEST) + p["lin2_b"]
    return x


def init_params(key):
    """Deterministic init matching PyTorch default shapes (uniform +-1/sqrt(fan_in))."""
    def u(k, shape, fan_in):
        bound = 1.0 / jnp.sqrt(jnp.float32(fan_in))
        return jax.random.uniform(k, shape, jnp.float32, -bound, bound)

    ks = jax.random.split(key, 10)
    return {
        "conv1_w": u(ks[0], (6, 1, 5, 5), 1 * 5 * 5),
        "conv1_b": u(ks[1], (6,), 1 * 5 * 5),
        "conv2_w": u(ks[2], (16, 6, 5, 5), 6 * 5 * 5),
        "conv2_b": u(ks[3], (16,), 6 * 5 * 5),
        "conv3_w": u(ks[4], (120, 16, 5, 5), 16 * 5 * 5),
        "conv3_b": u(ks[5], (120,), 16 * 5 * 5),
        "lin1_w": u(ks[6], (84, 120), 120),
        "lin1_b": u(ks[7], (84,), 120),
        "lin2_w": u(ks[8], (10, 84), 84),
        "lin2_b": u(ks[9], (10,), 84),
    }


if __name__ == "__main__":
    key = jax.random.PRNGKey(0)
    k_x, k_p = jax.random.split(key)

    # LeNet's forward implies a 32x32 single-channel input; keep batch small.
    x = jax.random.normal(k_x, (2, 1, 32, 32), dtype=jnp.float32)
    params = init_params(k_p)

    out = jax.block_until_ready(lenet_forward(x, params))
    assert out.shape == (2, 10), out.shape

    ref = jax.block_until_ready(lenet_reference(x, params))
    if not jnp.allclose(out, ref, rtol=2e-2, atol=2e-2):
        raise AssertionError(
            f"Pallas output mismatch: max abs err {jnp.max(jnp.abs(out - ref))}")

    print("KERNEL_OK")
</pallas_src>

<mosaic_0001>
module attributes {stable_mosaic.version = 11 : i64} {
  func.func @_lenet_kernel(%arg0: i32, %arg1: memref<1x32x32xf32, #tpu.memory_space<vmem>>, %arg2: memref<5x32x168xf32, #tpu.memory_space<vmem>>, %arg3: memref<1x168xf32, #tpu.memory_space<vmem>>, %arg4: memref<14x28xf32, #tpu.memory_space<vmem>>, %arg5: memref<168x84xf32, #tpu.memory_space<vmem>>, %arg6: memref<5x84x160xf32, #tpu.memory_space<vmem>>, %arg7: memref<1x160xf32, #tpu.memory_space<vmem>>, %arg8: memref<5x10xf32, #tpu.memory_space<vmem>>, %arg9: memref<160x80xf32, #tpu.memory_space<vmem>>, %arg10: memref<5x80x120xf32, #tpu.memory_space<vmem>>, %arg11: memref<1x120xf32, #tpu.memory_space<vmem>>, %arg12: memref<120x84xf32, #tpu.memory_space<vmem>>, %arg13: memref<1x84xf32, #tpu.memory_space<vmem>>, %arg14: memref<84x128xf32, #tpu.memory_space<vmem>>, %arg15: memref<1x128xf32, #tpu.memory_space<vmem>>, %arg16: memref<1x1x128xf32, #tpu.memory_space<vmem>>, %arg17: memref<14x84xf32, #tpu.memory_space<vmem>>, %arg18: memref<5x80xf32, #tpu.memory_space<vmem>>) attributes {dimension_semantics = [#tpu.dimension_semantics<parallel>], iteration_bounds = array<i64: 2>, scalar_prefetch = 0 : i64, scratch_operands = 2 : i64, tpu.core_type = #tpu.core_type<tc>, window_params = [{transform_indices = @transform_0, window_bounds = array<i64: 1, 32, 32>}, {pipeline_mode = #tpu.pipeline_mode<synchronous>, transform_indices = @transform_1, window_bounds = array<i64: 5, 32, 168>}, {pipeline_mode = #tpu.pipeline_mode<synchronous>, transform_indices = @transform_2, window_bounds = array<i64: 1, 168>}, {pipeline_mode = #tpu.pipeline_mode<synchronous>, transform_indices = @transform_3, window_bounds = array<i64: 14, 28>}, {pipeline_mode = #tpu.pipeline_mode<synchronous>, transform_indices = @transform_4, window_bounds = array<i64: 168, 84>}, {pipeline_mode = #tpu.pipeline_mode<synchronous>, transform_indices = @transform_5, window_bounds = array<i64: 5, 84, 160>}, {pipeline_mode = #tpu.pipeline_mode<synchronous>, transform_indices = @transform_6, window_bounds = array<i64: 1, 160>}, {pipeline_mode = #tpu.pipeline_mode<synchronous>, transform_indices = @transform_7, window_bounds = array<i64: 5, 10>}, {pipeline_mode = #tpu.pipeline_mode<synchronous>, transform_indices = @transform_8, window_bounds = array<i64: 160, 80>}, {pipeline_mode = #tpu.pipeline_mode<synchronous>, transform_indices = @transform_9, window_bounds = array<i64: 5, 80, 120>}, {pipeline_mode = #tpu.pipeline_mode<synchronous>, transform_indices = @transform_10, window_bounds = array<i64: 1, 120>}, {pipeline_mode = #tpu.pipeline_mode<synchronous>, transform_indices = @transform_11, window_bounds = array<i64: 120, 84>}, {pipeline_mode = #tpu.pipeline_mode<synchronous>, transform_indices = @transform_12, window_bounds = array<i64: 1, 84>}, {pipeline_mode = #tpu.pipeline_mode<synchronous>, transform_indices = @transform_13, window_bounds = array<i64: 84, 128>}, {pipeline_mode = #tpu.pipeline_mode<synchronous>, transform_indices = @transform_14, window_bounds = array<i64: 1, 128>}, {transform_indices = @transform_15, window_bounds = array<i64: 1, 1, 128>}]} {
    %c0 = arith.constant 0 : index
    %c0_0 = arith.constant 0 : index
    %c0_1 = arith.constant 0 : index
    %0 = vector.load %arg1[%c0, %c0_0, %c0_1] : memref<1x32x32xf32, #tpu.memory_space<vmem>>, vector<1x28x32xf32>
    %1 = vector.shape_cast %0 : vector<1x28x32xf32> to vector<28x32xf32>
    %c0_2 = arith.constant 0 : index
    %c0_3 = arith.constant 0 : index
    %c0_4 = arith.constant 0 : index
    %2 = vector.load %arg2[%c0_2, %c0_3, %c0_4] : memref<5x32x168xf32, #tpu.memory_space<vmem>>, vector<1x32x168xf32>
    %3 = vector.shape_cast %2 : vector<1x32x168xf32> to vector<32x168xf32>
    %cst = arith.constant dense<0.000000e+00> : vector<28x168xf32>
    %4 = tpu.matmul %1, %3, %cst {dimension_numbers = #tpu.dot_dimension_numbers<[1], [0], [0], [1], [0, 0, 1, 1], [], []>} : vector<28x32xf32>, vector<32x168xf32>, vector<28x168xf32> -> vector<28x168xf32>
    %c0_5 = arith.constant 0 : index
    %c1 = arith.constant 1 : index
    %c0_6 = arith.constant 0 : index
    %5 = vector.load %arg1[%c0_5, %c1, %c0_6] : memref<1x32x32xf32, #tpu.memory_space<vmem>>, vector<1x28x32xf32>
    %6 = vector.shape_cast %5 : vector<1x28x32xf32> to vector<28x32xf32>
    %c1_7 = arith.constant 1 : index
    %c0_8 = arith.constant 0 : index
    %c0_9 = arith.constant 0 : index
    %7 = vector.load %arg2[%c1_7, %c0_8, %c0_9] : memref<5x32x168xf32, #tpu.memory_space<vmem>>, vector<1x32x168xf32>
    %8 = vector.shape_cast %7 : vector<1x32x168xf32> to vector<32x168xf32>
    %cst_10 = arith.constant dense<0.000000e+00> : vector<28x168xf32>
    %9 = tpu.matmul %6, %8, %cst_10 {dimension_numbers = #tpu.dot_dimension_numbers<[1], [0], [0], [1], [0, 0, 1, 1], [], []>} : vector<28x32xf32>, vector<32x168xf32>, vector<28x168xf32> -> vector<28x168xf32>
    %10 = arith.addf %4, %9 : vector<28x168xf32>
    %c0_11 = arith.constant 0 : index
    %c2 = arith.constant 2 : index
    %c0_12 = arith.constant 0 : index
    %11 = vector.load %arg1[%c0_11, %c2, %c0_12] : memref<1x32x32xf32, #tpu.memory_space<vmem>>, vector<1x28x32xf32>
    %12 = vector.shape_cast %11 : vector<1x28x32xf32> to vector<28x32xf32>
    %c2_13 = arith.constant 2 : index
    %c0_14 = arith.constant 0 : index
    %c0_15 = arith.constant 0 : index
    %13 = vector.load %arg2[%c2_13, %c0_14, %c0_15] : memref<5x32x168xf32, #tpu.memory_space<vmem>>, vector<1x32x168xf32>
    %14 = vector.shape_cast %13 : vector<1x32x168xf32> to vector<32x168xf32>
    %cst_16 = arith.constant dense<0.000000e+00> : vector<28x168xf32>
    %15 = tpu.matmul %12, %14, %cst_16 {dimension_numbers = #tpu.dot_dimension_numbers<[1], [0], [0], [1], [0, 0, 1, 1], [], []>} : vector<28x32xf32>, vector<32x168xf32>, vector<28x168xf32> -> vector<28x168xf32>
    %16 = arith.addf %10, %15 : vector<28x168xf32>
    %c0_17 = arith.constant 0 : index
    %c3 = arith.constant 3 : index
    %c0_18 = arith.constant 0 : index
    %17 = vector.load %arg1[%c0_17, %c3, %c0_18] : memref<1x32x32xf32, #tpu.memory_space<vmem>>, vector<1x28x32xf32>
    %18 = vector.shape_cast %17 : vector<1x28x32xf32> to vector<28x32xf32>
    %c3_19 = arith.constant 3 : index
    %c0_20 = arith.constant 0 : index
    %c0_21 = arith.constant 0 : index
    %19 = vector.load %arg2[%c3_19, %c0_20, %c0_21] : memref<5x32x168xf32, #tpu.memory_space<vmem>>, vector<1x32x168xf32>
    %20 = vector.shape_cast %19 : vector<1x32x168xf32> to vector<32x168xf32>
    %cst_22 = arith.constant dense<0.000000e+00> : vector<28x168xf32>
    %21 = tpu.matmul %18, %20, %cst_22 {dimension_numbers = #tpu.dot_dimension_numbers<[1], [0], [0], [1], [0, 0, 1, 1], [], []>} : vector<28x32xf32>, vector<32x168xf32>, vector<28x168xf32> -> vector<28x168xf32>
    %22 = arith.addf %16, %21 : vector<28x168xf32>
    %c0_23 = arith.constant 0 : index
    %c4 = arith.constant 4 : index
    %c0_24 = arith.constant 0 : index
    %23 = vector.load %arg1[%c0_23, %c4, %c0_24] : memref<1x32x32xf32, #tpu.memory_space<vmem>>, vector<1x28x32xf32>
    %24 = vector.shape_cast %23 : vector<1x28x32xf32> to vector<28x32xf32>
    %c4_25 = arith.constant 4 : index
    %c0_26 = arith.constant 0 : index
    %c0_27 = arith.constant 0 : index
    %25 = vector.load %arg2[%c4_25, %c0_26, %c0_27] : memref<5x32x168xf32, #tpu.memory_space<vmem>>, vector<1x32x168xf32>
    %26 = vector.shape_cast %25 : vector<1x32x168xf32> to vector<32x168xf32>
    %cst_28 = arith.constant dense<0.000000e+00> : vector<28x168xf32>
    %27 = tpu.matmul %24, %26, %cst_28 {dimension_numbers = #tpu.dot_dimension_numbers<[1], [0], [0], [1], [0, 0, 1, 1], [], []>} : vector<28x32xf32>, vector<32x168xf32>, vector<28x168xf32> -> vector<28x168xf32>
    %28 = arith.addf %22, %27 : vector<28x168xf32>
    %c0_29 = arith.constant 0 : index
    %c0_30 = arith.constant 0 : index
    %29 = vector.load %arg3[%c0_29, %c0_30] : memref<1x168xf32, #tpu.memory_space<vmem>>, vector<1x168xf32>
    %30 = vector.broadcast %29 : vector<1x168xf32> to vector<28x168xf32>
    %31 = arith.addf %28, %30 : vector<28x168xf32>
    %cst_31 = arith.constant 0.000000e+00 : f32
    %32 = vector.broadcast %cst_31 : f32 to vector<28x168xf32>
    %33 = arith.maximumf %31, %32 : vector<28x168xf32>
    %c0_32 = arith.constant 0 : index
    %c0_33 = arith.constant 0 : index
    %34 = vector.load %arg4[%c0_32, %c0_33] : memref<14x28xf32, #tpu.memory_space<vmem>>, vector<14x28xf32>
    %cst_34 = arith.constant dense<0.000000e+00> : vector<14x168xf32>
    %35 = tpu.matmul %34, %33, %cst_34 {dimension_numbers = #tpu.dot_dimension_numbers<[1], [0], [0], [1], [0, 0, 1, 1], [], []>} : vector<14x28xf32>, vector<28x168xf32>, vector<14x168xf32> -> vector<14x168xf32>
    %c0_35 = arith.constant 0 : index
    %c0_36 = arith.constant 0 : index
    %36 = vector.load %arg5[%c0_35, %c0_36] : memref<168x84xf32, #tpu.memory_space<vmem>>, vector<168x84xf32>
    %cst_37 = arith.constant dense<0.000000e+00> : vector<14x84xf32>
    %37 = tpu.matmul %35, %36, %cst_37 {dimension_numbers = #tpu.dot_dimension_numbers<[1], [0], [0], [1], [0, 0, 1, 1], [], []>} : vector<14x168xf32>, vector<168x84xf32>, vector<14x84xf32> -> vector<14x84xf32>
    %c0_38 = arith.constant 0 : index
    %c0_39 = arith.constant 0 : index
    %38 = vector.load %arg17[%c0_38, %c0_39] : memref<14x84xf32, #tpu.memory_space<vmem>>, vector<14x84xf32>
    tpu.vector_store %arg17[%c0_38, %c0_39], %37 {strides = array<i32>} : memref<14x84xf32, #tpu.memory_space<vmem>>, vector<14x84xf32>,
    %c0_40 = arith.constant 0 : index
    %c0_41 = arith.constant 0 : index
    %39 = vector.load %arg17[%c0_40, %c0_41] : memref<14x84xf32, #tpu.memory_space<vmem>>, vector<10x84xf32>
    %c0_42 = arith.constant 0 : index
    %c0_43 = arith.constant 0 : index
    %c0_44 = arith.constant 0 : index
    %40 = vector.load %arg6[%c0_42, %c0_43, %c0_44] : memref<5x84x160xf32, #tpu.memory_space<vmem>>, vector<1x84x160xf32>
    %41 = vector.shape_cast %40 : vector<1x84x160xf32> to vector<84x160xf32>
    %cst_45 = arith.constant dense<0.000000e+00> : vector<10x160xf32>
    %42 = tpu.matmul %39, %41, %cst_45 {dimension_numbers = #tpu.dot_dimension_numbers<[1], [0], [0], [1], [0, 0, 1, 1], [], []>} : vector<10x84xf32>, vector<84x160xf32>, vector<10x160xf32> -> vector<10x160xf32>
    %c1_46 = arith.constant 1 : index
    %c0_47 = arith.constant 0 : index
    %43 = vector.load %arg17[%c1_46, %c0_47] : memref<14x84xf32, #tpu.memory_space<vmem>>, vector<10x84xf32>
    %c1_48 = arith.constant 1 : index
    %c0_49 = arith.constant 0 : index
    %c0_50 = arith.constant 0 : index
    %44 = vector.load %arg6[%c1_48, %c0_49, %c0_50] : memref<5x84x160xf32, #tpu.memory_space<vmem>>, vector<1x84x160xf32>
    %45 = vector.shape_cast %44 : vector<1x84x160xf32> to vector<84x160xf32>
    %cst_51 = arith.constant dense<0.000000e+00> : vector<10x160xf32>
    %46 = tpu.matmul %43, %45, %cst_51 {dimension_numbers = #tpu.dot_dimension_numbers<[1], [0], [0], [1], [0, 0, 1, 1], [], []>} : vector<10x84xf32>, vector<84x160xf32>, vector<10x160xf32> -> vector<10x160xf32>
    %47 = arith.addf %42, %46 : vector<10x160xf32>
    %c2_52 = arith.constant 2 : index
    %c0_53 = arith.constant 0 : index
    %48 = vector.load %arg17[%c2_52, %c0_53] : memref<14x84xf32, #tpu.memory_space<vmem>>, vector<10x84xf32>
    %c2_54 = arith.constant 2 : index
    %c0_55 = arith.constant 0 : index
    %c0_56 = arith.constant 0 : index
    %49 = vector.load %arg6[%c2_54, %c0_55, %c0_56] : memref<5x84x160xf32, #tpu.memory_space<vmem>>, vector<1x84x160xf32>
    %50 = vector.shape_cast %49 : vector<1x84x160xf32> to vector<84x160xf32>
    %cst_57 = arith.constant dense<0.000000e+00> : vector<10x160xf32>
    %51 = tpu.matmul %48, %50, %cst_57 {dimension_numbers = #tpu.dot_dimension_numbers<[1], [0], [0], [1], [0, 0, 1, 1], [], []>} : vector<10x84xf32>, vector<84x160xf32>, vector<10x160xf32> -> vector<10x160xf32>
    %52 = arith.addf %47, %51 : vector<10x160xf32>
    %c3_58 = arith.constant 3 : index
    %c0_59 = arith.constant 0 : index
    %53 = vector.load %arg17[%c3_58, %c0_59] : memref<14x84xf32, #tpu.memory_space<vmem>>, vector<10x84xf32>
    %c3_60 = arith.constant 3 : index
    %c0_61 = arith.constant 0 : index
    %c0_62 = arith.constant 0 : index
    %54 = vector.load %arg6[%c3_60, %c0_61, %c0_62] : memref<5x84x160xf32, #tpu.memory_space<vmem>>, vector<1x84x160xf32>
    %55 = vector.shape_cast %54 : vector<1x84x160xf32> to vector<84x160xf32>
    %cst_63 = arith.constant dense<0.000000e+00> : vector<10x160xf32>
    %56 = tpu.matmul %53, %55, %cst_63 {dimension_numbers = #tpu.dot_dimension_numbers<[1], [0], [0], [1], [0, 0, 1, 1], [], []>} : vector<10x84xf32>, vector<84x160xf32>, vector<10x160xf32> -> vector<10x160xf32>
    %57 = arith.addf %52, %56 : vector<10x160xf32>
    %c4_64 = arith.constant 4 : index
    %c0_65 = arith.constant 0 : index
    %58 = vector.load %arg17[%c4_64, %c0_65] : memref<14x84xf32, #tpu.memory_space<vmem>>, vector<10x84xf32>
    %c4_66 = arith.constant 4 : index
    %c0_67 = arith.constant 0 : index
    %c0_68 = arith.constant 0 : index
    %59 = vector.load %arg6[%c4_66, %c0_67, %c0_68] : memref<5x84x160xf32, #tpu.memory_space<vmem>>, vector<1x84x160xf32>
    %60 = vector.shape_cast %59 : vector<1x84x160xf32> to vector<84x160xf32>
    %cst_69 = arith.constant dense<0.000000e+00> : vector<10x160xf32>
    %61 = tpu.matmul %58, %60, %cst_69 {dimension_numbers = #tpu.dot_dimension_numbers<[1], [0], [0], [1], [0, 0, 1, 1], [], []>} : vector<10x84xf32>, vector<84x160xf32>, vector<10x160xf32> -> vector<10x160xf32>
    %62 = arith.addf %57, %61 : vector<10x160xf32>
    %c0_70 = arith.constant 0 : index
    %c0_71 = arith.constant 0 : index
    %63 = vector.load %arg7[%c0_70, %c0_71] : memref<1x160xf32, #tpu.memory_space<vmem>>, vector<1x160xf32>
    %64 = vector.broadcast %63 : vector<1x160xf32> to vector<10x160xf32>
    %65 = arith.addf %62, %64 : vector<10x160xf32>
    %cst_72 = arith.constant 0.000000e+00 : f32
    %66 = vector.broadcast %cst_72 : f32 to vector<10x160xf32>
    %67 = arith.maximumf %65, %66 : vector<10x160xf32>
    %c0_73 = arith.constant 0 : index
    %c0_74 = arith.constant 0 : index
    %68 = vector.load %arg8[%c0_73, %c0_74] : memref<5x10xf32, #tpu.memory_space<vmem>>, vector<5x10xf32>
    %cst_75 = arith.constant dense<0.000000e+00> : vector<5x160xf32>
    %69 = tpu.matmul %68, %67, %cst_75 {dimension_numbers = #tpu.dot_dimension_numbers<[1], [0], [0], [1], [0, 0, 1, 1], [], []>} : vector<5x10xf32>, vector<10x160xf32>, vector<5x160xf32> -> vector<5x160xf32>
    %c0_76 = arith.constant 0 : index
    %c0_77 = arith.constant 0 : index
    %70 = vector.load %arg9[%c0_76, %c0_77] : memref<160x80xf32, #tpu.memory_space<vmem>>, vector<160x80xf32>
    %cst_78 = arith.constant dense<0.000000e+00> : vector<5x80xf32>
    %71 = tpu.matmul %69, %70, %cst_78 {dimension_numbers = #tpu.dot_dimension_numbers<[1], [0], [0], [1], [0, 0, 1, 1], [], []>} : vector<5x160xf32>, vector<160x80xf32>, vector<5x80xf32> -> vector<5x80xf32>
    %c0_79 = arith.constant 0 : index
    %c0_80 = arith.constant 0 : index
    %72 = vector.load %arg18[%c0_79, %c0_80] : memref<5x80xf32, #tpu.memory_space<vmem>>, vector<5x80xf32>
    tpu.vector_store %arg18[%c0_79, %c0_80], %71 {strides = array<i32>} : memref<5x80xf32, #tpu.memory_space<vmem>>, vector<5x80xf32>,
    %c0_81 = arith.constant 0 : index
    %c0_82 = arith.constant 0 : index
    %73 = vector.load %arg18[%c0_81, %c0_82] : memref<5x80xf32, #tpu.memory_space<vmem>>, vector<1x80xf32>
    %c0_83 = arith.constant 0 : index
    %c0_84 = arith.constant 0 : index
    %c0_85 = arith.constant 0 : index
    %74 = vector.load %arg10[%c0_83, %c0_84, %c0_85] : memref<5x80x120xf32, #tpu.memory_space<vmem>>, vector<1x80x120xf32>
    %75 = vector.shape_cast %74 : vector<1x80x120xf32> to vector<80x120xf32>
    %cst_86 = arith.constant dense<0.000000e+00> : vector<1x120xf32>
    %76 = tpu.matmul %73, %75, %cst_86 {dimension_numbers = #tpu.dot_dimension_numbers<[1], [0], [0], [1], [0, 0, 1, 1], [], []>} : vector<1x80xf32>, vector<80x120xf32>, vector<1x120xf32> -> vector<1x120xf32>
    %c1_87 = arith.constant 1 : index
    %c0_88 = arith.constant 0 : index
    %77 = vector.load %arg18[%c1_87, %c0_88] : memref<5x80xf32, #tpu.memory_space<vmem>>, vector<1x80xf32>
    %c1_89 = arith.constant 1 : index
    %c0_90 = arith.constant 0 : index
    %c0_91 = arith.constant 0 : index
    %78 = vector.load %arg10[%c1_89, %c0_90, %c0_91] : memref<5x80x120xf32, #tpu.memory_space<vmem>>, vector<1x80x120xf32>
    %79 = vector.shape_cast %78 : vector<1x80x120xf32> to vector<80x120xf32>
    %cst_92 = arith.constant dense<0.000000e+00> : vector<1x120xf32>
    %80 = tpu.matmul %77, %79, %cst_92 {dimension_numbers = #tpu.dot_dimension_numbers<[1], [0], [0], [1], [0, 0, 1, 1], [], []>} : vector<1x80xf32>, vector<80x120xf32>, vector<1x120xf32> -> vector<1x120xf32>
    %81 = arith.addf %76, %80 : vector<1x120xf32>
    %c2_93 = arith.constant 2 : index
    %c0_94 = arith.constant 0 : index
    %82 = vector.load %arg18[%c2_93, %c0_94] : memref<5x80xf32, #tpu.memory_space<vmem>>, vector<1x80xf32>
    %c2_95 = arith.constant 2 : index
    %c0_96 = arith.constant 0 : index
    %c0_97 = arith.constant 0 : index
    %83 = vector.load %arg10[%c2_95, %c0_96, %c0_97] : memref<5x80x120xf32, #tpu.memory_space<vmem>>, vector<1x80x120xf32>
    %84 = vector.shape_cast %83 : vector<1x80x120xf32> to vector<80x120xf32>
    %cst_98 = arith.constant dense<0.000000e+00> : vector<1x120xf32>
    %85 = tpu.matmul %82, %84, %cst_98 {dimension_numbers = #tpu.dot_dimension_numbers<[1], [0], [0], [1], [0, 0, 1, 1], [], []>} : vector<1x80xf32>, vector<80x120xf32>, vector<1x120xf32> -> vector<1x120xf32>
    %86 = arith.addf %81, %85 : vector<1x120xf32>
    %c3_99 = arith.constant 3 : index
    %c0_100 = arith.constant 0 : index
    %87 = vector.load %arg18[%c3_99, %c0_100] : memref<5x80xf32, #tpu.memory_space<vmem>>, vector<1x80xf32>
    %c3_101 = arith.constant 3 : index
    %c0_102 = arith.constant 0 : index
    %c0_103 = arith.constant 0 : index
    %88 = vector.load %arg10[%c3_101, %c0_102, %c0_103] : memref<5x80x120xf32, #tpu.memory_space<vmem>>, vector<1x80x120xf32>
    %89 = vector.shape_cast %88 : vector<1x80x120xf32> to vector<80x120xf32>
    %cst_104 = arith.constant dense<0.000000e+00> : vector<1x120xf32>
    %90 = tpu.matmul %87, %89, %cst_104 {dimension_numbers = #tpu.dot_dimension_numbers<[1], [0], [0], [1], [0, 0, 1, 1], [], []>} : vector<1x80xf32>, vector<80x120xf32>, vector<1x120xf32> -> vector<1x120xf32>
    %91 = arith.addf %86, %90 : vector<1x120xf32>
    %c4_105 = arith.constant 4 : index
    %c0_106 = arith.constant 0 : index
    %92 = vector.load %arg18[%c4_105, %c0_106] : memref<5x80xf32, #tpu.memory_space<vmem>>, vector<1x80xf32>
    %c4_107 = arith.constant 4 : index
    %c0_108 = arith.constant 0 : index
    %c0_109 = arith.constant 0 : index
    %93 = vector.load %arg10[%c4_107, %c0_108, %c0_109] : memref<5x80x120xf32, #tpu.memory_space<vmem>>, vector<1x80x120xf32>
    %94 = vector.shape_cast %93 : vector<1x80x120xf32> to vector<80x120xf32>
    %cst_110 = arith.constant dense<0.000000e+00> : vector<1x120xf32>
    %95 = tpu.matmul %92, %94, %cst_110 {dimension_numbers = #tpu.dot_dimension_numbers<[1], [0], [0], [1], [0, 0, 1, 1], [], []>} : vector<1x80xf32>, vector<80x120xf32>, vector<1x120xf32> -> vector<1x120xf32>
    %96 = arith.addf %91, %95 : vector<1x120xf32>
    %c0_111 = arith.constant 0 : index
    %c0_112 = arith.constant 0 : index
    %97 = vector.load %arg11[%c0_111, %c0_112] : memref<1x120xf32, #tpu.memory_space<vmem>>, vector<1x120xf32>
    %98 = arith.addf %96, %97 : vector<1x120xf32>
    %cst_113 = arith.constant 0.000000e+00 : f32
    %99 = vector.broadcast %cst_113 : f32 to vector<1x120xf32>
    %100 = arith.maximumf %98, %99 : vector<1x120xf32>
    %c0_114 = arith.constant 0 : index
    %c0_115 = arith.constant 0 : index
    %101 = vector.load %arg12[%c0_114, %c0_115] : memref<120x84xf32, #tpu.memory_space<vmem>>, vector<120x84xf32>
    %cst_116 = arith.constant dense<0.000000e+00> : vector<1x84xf32>
    %102 = tpu.matmul %100, %101, %cst_116 {dimension_numbers = #tpu.dot_dimension_numbers<[1], [0], [0], [1], [0, 0, 1, 1], [], []>} : vector<1x120xf32>, vector<120x84xf32>, vector<1x84xf32> -> vector<1x84xf32>
    %c0_117 = arith.constant 0 : index
    %c0_118 = arith.constant 0 : index
    %103 = vector.load %arg13[%c0_117, %c0_118] : memref<1x84xf32, #tpu.memory_space<vmem>>, vector<1x84xf32>
    %104 = arith.addf %102, %103 : vector<1x84xf32>
    %cst_119 = arith.constant 0.000000e+00 : f32
    %105 = vector.broadcast %cst_119 : f32 to vector<1x84xf32>
    %106 = arith.maximumf %104, %105 : vector<1x84xf32>
    %c0_120 = arith.constant 0 : index
    %c0_121 = arith.constant 0 : index
    %107 = vector.load %arg14[%c0_120, %c0_121] : memref<84x128xf32, #tpu.memory_space<vmem>>, vector<84x128xf32>
    %cst_122 = arith.constant dense<0.000000e+00> : vector<1x128xf32>
    %108 = tpu.matmul %106, %107, %cst_122 {dimension_numbers = #tpu.dot_dimension_numbers<[1], [0], [0], [1], [0, 0, 1, 1], [], []>} : vector<1x84xf32>, vector<84x128xf32>, vector<1x128xf32> -> vector<1x128xf32>
    %c0_123 = arith.constant 0 : index
    %c0_124 = arith.constant 0 : index
    %109 = vector.load %arg15[%c0_123, %c0_124] : memref<1x128xf32, #tpu.memory_space<vmem>>, vector<1x128xf32>
    %110 = arith.addf %108, %109 : vector<1x128xf32>
    %c0_125 = arith.constant 0 : index
    %c0_126 = arith.constant 0 : index
    %c0_127 = arith.constant 0 : index
    %111 = vector.load %arg16[%c0_125, %c0_126, %c0_127] : memref<1x1x128xf32, #tpu.memory_space<vmem>>, vector<1x1x128xf32>
    %112 = vector.shape_cast %111 : vector<1x1x128xf32> to vector<1x128xf32>
    %113 = vector.shape_cast %110 : vector<1x128xf32> to vector<1x1x128xf32>
    tpu.vector_store %arg16[%c0_125, %c0_126, %c0_127], %113 {strides = array<i32>} : memref<1x1x128xf32, #tpu.memory_space<vmem>>, vector<1x1x128xf32>,
    return
  }
  func.func @transform_0(%arg0: i32) -> (i32, i32, i32) {
    %c0_i32 = arith.constant 0 : i32
    %c0_i32_0 = arith.constant 0 : i32
    %c0_i32_1 = arith.constant 0 : i32
    return %arg0, %c0_i32, %c0_i32_0 : i32, i32, i32
  }
  func.func @transform_1(%arg0: i32) -> (i32, i32, i32) {
    %c0_i32 = arith.constant 0 : i32
    %c0_i32_0 = arith.constant 0 : i32
    %c0_i32_1 = arith.constant 0 : i32
    %c0_i32_2 = arith.constant 0 : i32
    return %c0_i32, %c0_i32_0, %c0_i32_1 : i32, i32, i32
  }
  func.func @transform_2(%arg0: i32) -> (i32, i32) {
    %c0_i32 = arith.constant 0 : i32
    %c0_i32_0 = arith.constant 0 : i32
    %c0_i32_1 = arith.constant 0 : i32
    return %c0_i32, %c0_i32_0 : i32, i32
  }
  func.func @transform_3(%arg0: i32) -> (i32, i32) {
    %c0_i32 = arith.constant 0 : i32
    %c0_i32_0 = arith.constant 0 : i32
    %c0_i32_1 = arith.constant 0 : i32
    return %c0_i32, %c0_i32_0 : i32, i32
  }
  func.func @transform_4(%arg0: i32) -> (i32, i32) {
    %c0_i32 = arith.constant 0 : i32
    %c0_i32_0 = arith.constant 0 : i32
    %c0_i32_1 = arith.constant 0 : i32
    return %c0_i32, %c0_i32_0 : i32, i32
  }
  func.func @transform_5(%arg0: i32) -> (i32, i32, i32) {
    %c0_i32 = arith.constant 0 : i32
    %c0_i32_0 = arith.constant 0 : i32
    %c0_i32_1 = arith.constant 0 : i32
    %c0_i32_2 = arith.constant 0 : i32
    return %c0_i32, %c0_i32_0, %c0_i32_1 : i32, i32, i32
  }
  func.func @transform_6(%arg0: i32) -> (i32, i32) {
    %c0_i32 = arith.constant 0 : i32
    %c0_i32_0 = arith.constant 0 : i32
    %c0_i32_1 = arith.constant 0 : i32
    return %c0_i32, %c0_i32_0 : i32, i32
  }
  func.func @transform_7(%arg0: i32) -> (i32, i32) {
    %c0_i32 = arith.constant 0 : i32
    %c0_i32_0 = arith.constant 0 : i32
    %c0_i32_1 = arith.constant 0 : i32
    return %c0_i32, %c0_i32_0 : i32, i32
  }
  func.func @transform_8(%arg0: i32) -> (i32, i32) {
    %c0_i32 = arith.constant 0 : i32
    %c0_i32_0 = arith.constant 0 : i32
    %c0_i32_1 = arith.constant 0 : i32
    return %c0_i32, %c0_i32_0 : i32, i32
  }
  func.func @transform_9(%arg0: i32) -> (i32, i32, i32) {
    %c0_i32 = arith.constant 0 : i32
    %c0_i32_0 = arith.constant 0 : i32
    %c0_i32_1 = arith.constant 0 : i32
    %c0_i32_2 = arith.constant 0 : i32
    return %c0_i32, %c0_i32_0, %c0_i32_1 : i32, i32, i32
  }
  func.func @transform_10(%arg0: i32) -> (i32, i32) {
    %c0_i32 = arith.constant 0 : i32
    %c0_i32_0 = arith.constant 0 : i32
    %c0_i32_1 = arith.constant 0 : i32
    return %c0_i32, %c0_i32_0 : i32, i32
  }
  func.func @transform_11(%arg0: i32) -> (i32, i32) {
    %c0_i32 = arith.constant 0 : i32
    %c0_i32_0 = arith.constant 0 : i32
    %c0_i32_1 = arith.constant 0 : i32
    return %c0_i32, %c0_i32_0 : i32, i32
  }
  func.func @transform_12(%arg0: i32) -> (i32, i32) {
    %c0_i32 = arith.constant 0 : i32
    %c0_i32_0 = arith.constant 0 : i32
    %c0_i32_1 = arith.constant 0 : i32
    return %c0_i32, %c0_i32_0 : i32, i32
  }
  func.func @transform_13(%arg0: i32) -> (i32, i32) {
    %c0_i32 = arith.constant 0 : i32
    %c0_i32_0 = arith.constant 0 : i32
    %c0_i32_1 = arith.constant 0 : i32
    return %c0_i32, %c0_i32_0 : i32, i32
  }
  func.func @transform_14(%arg0: i32) -> (i32, i32) {
    %c0_i32 = arith.constant 0 : i32
    %c0_i32_0 = arith.constant 0 : i32
    %c0_i32_1 = arith.constant 0 : i32
    return %c0_i32, %c0_i32_0 : i32, i32
  }
  func.func @transform_15(%arg0: i32) -> (i32, i32, i32) {
    %c0_i32 = arith.constant 0 : i32
    %c0_i32_0 = arith.constant 0 : i32
    %c0_i32_1 = arith.constant 0 : i32
    return %arg0, %c0_i32, %c0_i32_0 : i32, i32, i32
  }
}

</mosaic_0001>

<bundles_post_ra>
// kernel: tile.13
= control target key start
LH: loop header
LB: loop body
LE: loop exit
PB: predicated region body
PF: predicated region fallthrough
CT: control target
= control target key end

     0   :  { %s40_s0 = inlined_call_operand.vmem [shape: f32[6], index: 0, kind: input, shape index: {}]   ;;  %s41_s1 = inlined_call_operand.vmem [shape: f32[28,6], index: 1, kind: output, shape index: {}]  }
   0x1   :  { %v4_v0 = vld [vmem:[%s40_s0] ss:$0 sm:$0xff] }
   0x2   :  { %5 = vst [vmem:[%s41_s1] sm:$0xff] %v4_v0 }
   0x3   :  { %12 = vst [vmem:[%s41_s1 + $0x8] sm:$0xff] %v4_v0 }
   0x4   :  { %13 = vst [vmem:[%s41_s1 + $0x10] sm:$0xff] %v4_v0 }
   0x5   :  { %14 = vst [vmem:[%s41_s1 + $0x18] sm:$0xff] %v4_v0 }

// kernel: tile.14
= control target key start
LH: loop header
LB: loop body
LE: loop exit
PB: predicated region body
PF: predicated region fallthrough
CT: control target
= control target key end

     0   :  { %vm9_vm0 = vcmask 15360   ;;  %s248_s12 = smov 126   ;;  %s249_s13 = smov 114   ;;  %vm3_vm1 = vcmask 48128   ;;  %vm13_vm2 = vcmask 31744   ;;  %vm16_vm3 = vcmask 1048560   ;;  %s378_s0 = inlined_call_operand.vmem [shape: f32[28,6], index: 0, kind: input, shape index: {}]   ;;  %s379_s1 = inlined_call_operand.vmem [shape: f32[1,168], index: 1, kind: output, shape index: {}]  }
   0x1   :  { %v192_v0 = vld [vmem:[%s378_s0 + $0x15] sm:$0x1]   ;;  %v195_v3 = vld [vmem:[%s378_s0 + $0x13] sm:$0x1]   ;;  %v197_v4 = vld [vmem:[%s378_s0 + $0x11] sm:$0x1]  }
   0x2   :  { %v193_v1 = vld [vmem:[%s378_s0 + $0x15] sm:$0x1]   ;;  %26 = vrot.lane.b32.xlu1 %v195_v3, %s249_s13  ;;  %s250_s16 = smov 102   ;;  %v194_v5 = vld [vmem:[%s378_s0 + $0x14] sm:$0x1]   ;;  %s251_s21 = smov 120  }
   0x3   :  { %v10_v2 = vsel %vm9_vm0, %v193_v1, %v192_v0  ;;  %38 = vrot.lane.b32.xlu2 %v197_v4, %s250_s16  ;;  %v196_v6 = vld [vmem:[%s378_s0 + $0x12] sm:$0x1]   ;;  %s252_s22 = smov 108   ;;  %v198_v7 = vld [vmem:[%s378_s0 + $0x10] sm:$0x1]   ;;  %s253_s25 = smov 96  }
   0x4   :  { %11 = vrot.lane.b32.xlu0 %v10_v2, %s248_s12  ;;  %v199_v8 = vld [vmem:[%s378_s0 + $0xf] sm:$0x1]   ;;  %v200_v9 = vld [vmem:[%s378_s0 + $0xe] sm:$0x1]   ;;  %s254_s30 = smov 90   ;;  %s255_s2 = smov 84  }
   0x5   :  { %v201_v10 = vld [vmem:[%s378_s0 + $0xd] sm:$0x1]   ;;  %s256_s5 = smov 78   ;;  %v202_v11 = vld [vmem:[%s378_s0 + $0xc] sm:$0x1]   ;;  %s257_s10 = smov 72  }
   0x6   :  { %v203_v12 = vld [vmem:[%s378_s0 + $0xb] sm:$0x1]   ;;  %s258_s11 = smov 66   ;;  %v204_v13 = vld [vmem:[%s378_s0 + $0xa] sm:$0x1]   ;;  %s259_s14 = smov 60  }
   0x7   :  { %v205_v14 = vld [vmem:[%s378_s0 + $0x9] sm:$0x1]   ;;  %v206_v15 = vld [vmem:[%s378_s0 + $0x8] sm:$0x1]   ;;  %s260_s19 = smov 54   ;;  %s261_s20 = smov 48  }
   0x8   :  { %v207_v16 = vld [vmem:[%s378_s0 + $0x7] sm:$0x1]   ;;  %s262_s23 = smov 42   ;;  %v208_v17 = vld [vmem:[%s378_s0 + $0x6] sm:$0x1]   ;;  %s263_s28 = smov 36  }
   0x9   :  { %v209_v18 = vld [vmem:[%s378_s0 + $0x1b] sm:$0x1]   ;;  %s264_s29 = smov 34   ;;  %v210_v19 = vld [vmem:[%s378_s0 + $0x5] sm:$0x1]   ;;  %s265_s3 = smov 30  }
   0xa   :  { %32 = vrot.lane.b32.xlu1 %v196_v6, %s252_s22  ;;  %v211_v20 = vld [vmem:[%s378_s0 + $0x1a] sm:$0x1]   ;;  %v212_v21 = vld [vmem:[%s378_s0 + $0x4] sm:$0x1]   ;;  %s266_s8 = smov 28   ;;  %s267_s9 = smov 24  }
   0xb   :  { %44 = vrot.lane.b32.xlu2 %v198_v7, %s253_s25  ;;  %v213_v22 = vld [vmem:[%s378_s0 + $0x19] sm:$0x1]   ;;  %s268_s12 = smov 22   ;;  %v214_v23 = vld [vmem:[%s378_s0 + $0x3] sm:$0x1]   ;;  %s269_s17 = smov 18  }
   0xc   :  { %20 = vrot.lane.b32.xlu0 %v194_v5, %s251_s21  ;;  %v215_v24 = vld [vmem:[%s378_s0 + $0x18] sm:$0x1]   ;;  %s270_s18 = smov 16   ;;  %v216_v25 = vld [vmem:[%s378_s0 + $0x2] sm:$0x1]   ;;  %s271_s21 = smov 12  }
   0xd   :  { %v217_v26 = vld [vmem:[%s378_s0 + $0x17] sm:$0x1]   ;;  %v218_v27 = vld [vmem:[%s378_s0 + $0x1] sm:$0x1]   ;;  %s272_s26 = smov 10   ;;  %s273_s27 = smov 6  }
   0xe   :  { %v219_v28 = vld [vmem:[%s378_s0 + $0x16] sm:$0x1]   ;;  %v2_v29 = vld [vmem:[%s378_s0] sm:$0x1]   ;;  %vm22_vm4 = vcmask 1032128   ;;  %vm28_vm5 = vcmask 982928  }
   0xf   :  { %4 = vst.msk [vmem:[#allocation0] sm:$0x1] %vm3_vm1, %v2_v29   ;;  %vm34_vm6 = vcmask 933728   ;;  %vm40_vm7 = vcmask 884528   ;;  %vm46_vm8 = vcmask 835328   ;;  %vm52_vm9 = vcmask 786128  }
  0x10   :  { %vm58_vm10 = vcmask 736928   ;;  %vm64_vm11 = vcmask 687728   ;;  %vm70_vm12 = vcmask 638528   ;;  %vm76_vm13 = vcmask 589328  }
  0x11   :  { %vm82_vm14 = vcmask 540128   ;;  %vm88_vm15 = vcmask 490928   ;;  %vm94_vm0 = vcmask 441728   ;;  %vm100_vm1 = vcmask 392528  }
  0x12   :  { %56 = vrot.lane.b32.xlu1 %v200_v9, %s255_s2 }
  0x13   :  { %62 = vrot.lane.b32.xlu2 %v201_v10, %s256_s5 }
  0x14   :  { %50 = vrot.lane.b32.xlu0 %v199_v8, %s254_s30  ;;  %s274_s30 = smov 4  }
  0x1a   :  { %74 = vrot.lane.b32.xlu1 %v203_v12, %s258_s11 }
  0x1b   :  { %80 = vrot.lane.b32.xlu2 %v204_v13, %s259_s14 }
  0x1c   :  { %68 = vrot.lane.b32.xlu0 %v202_v11, %s257_s10 }
  0x22   :  { %92 = vrot.lane.b32.xlu1 %v206_v15, %s261_s20 }
  0x23   :  { %98 = vrot.lane.b32.xlu2 %v207_v16, %s262_s23 }
  0x24   :  { %86 = vrot.lane.b32.xlu0 %v205_v14, %s260_s19 }
  0x2a   :  { %110 = vrot.lane.b32.xlu1 %v209_v18, %s264_s29 }
  0x2b   :  { %117 = vrot.lane.b32.xlu2 %v210_v19, %s265_s3 }
  0x2c   :  { %104 = vrot.lane.b32.xlu0 %v208_v17, %s263_s28 }
  0x32   :  { %130 = vrot.lane.b32.xlu1 %v212_v21, %s267_s9 }
  0x33   :  { %136 = vrot.lane.b32.xlu2 %v213_v22, %s268_s12 }
  0x34   :  { %123 = vrot.lane.b32.xlu0 %v211_v20, %s266_s8 }
  0x3a   :  { %149 = vrot.lane.b32.xlu1 %v215_v24, %s270_s18 }
  0x3b   :  { %156 = vrot.lane.b32.xlu2 %v216_v25, %s271_s21 }
  0x3c   :  { %143 = vrot.lane.b32.xlu0 %v214_v23, %s269_s17 }
  0x42   :  { %169 = vrot.lane.b32.xlu1 %v218_v27, %s273_s27 }
  0x43   :  { %175 = vrot.lane.b32.xlu2 %v219_v28, %s274_s30 }
  0x44   :  { %162 = vrot.lane.b32.xlu0 %v217_v26, %s272_s26 }
  0x5d   :  { %v39_v30 = vpop.permute.xlu2 %38  }
  0x65   :  { %v45_v31 = vpop.permute.xlu2 %44  }
  0x6d   :  { %v63_v32 = vpop.permute.xlu2 %62  }
  0x74   :  { %v27_v34 = vpop.permute.xlu1 %26  }
  0x75   :  { %v81_v35 = vpop.permute.xlu2 %80  }
  0x76   :  { %v12_v33 = vpop.permute.xlu0 %11  }
  0x77   :  { %15 = vst.msk [vmem:[#allocation0 + $0x8] sm:$0x1] %vm13_vm2, %v12_v33   ;;  %vm106_vm2 = vcmask 343328  }
  0x78   :  { %17 = vst.msk [vmem:[#allocation0] sm:$0x1] %vm16_vm3, %v12_v33   ;;  %vm119_vm3 = vcmask 294128  }
  0x7c   :  { %v33_v37 = vpop.permute.xlu1 %32  }
  0x7d   :  { %v99_v38 = vpop.permute.xlu2 %98  }
  0x7e   :  { %v21_v36 = vpop.permute.xlu0 %20  }
  0x7f   :  { %23 = vst.msk [vmem:[#allocation0] sm:$0x1] %vm22_vm4, %v21_v36   ;;  %vm112_vm4 = vcmask 326928  }
  0x80   :  { %29 = vst.msk [vmem:[#allocation0] sm:$0x1] %vm28_vm5, %v27_v34   ;;  %vm125_vm5 = vcmask 277728  }
  0x81   :  { %35 = vst.msk [vmem:[#allocation0] sm:$0x1] %vm34_vm6, %v33_v37   ;;  %vm138_vm6 = vcmask 228528  }
  0x82   :  { %41 = vst.msk [vmem:[#allocation0] sm:$0x1] %vm40_vm7, %v39_v30   ;;  %vm132_vm7 = vcmask 244928  }
  0x83   :  { %47 = vst.msk [vmem:[#allocation0] sm:$0x1] %vm46_vm8, %v45_v31   ;;  %vm145_vm8 = vcmask 195728  }
  0x84   :  { %v57_v40 = vpop.permute.xlu1 %56  }
  0x85   :  { %v118_v41 = vpop.permute.xlu2 %117  }
  0x86   :  { %v51_v39 = vpop.permute.xlu0 %50  }
  0x87   :  { %53 = vst.msk [vmem:[#allocation0] sm:$0x1] %vm52_vm9, %v51_v39   ;;  %vm158_vm9 = vcmask 146528  }
  0x88   :  { %59 = vst.msk [vmem:[#allocation0] sm:$0x1] %vm58_vm10, %v57_v40   ;;  %vm151_vm10 = vcmask 179328  }
  0x89   :  { %65 = vst.msk [vmem:[#allocation0] sm:$0x1] %vm64_vm11, %v63_v32   ;;  %vm164_vm11 = vcmask 130128  }
  0x8c   :  { %v75_v43 = vpop.permute.xlu1 %74  }
  0x8d   :  { %v137_v44 = vpop.permute.xlu2 %136  }
  0x8e   :  { %v69_v42 = vpop.permute.xlu0 %68  }
  0x8f   :  { %71 = vst.msk [vmem:[#allocation0] sm:$0x1] %vm70_vm12, %v69_v42   ;;  %vm177_vm12 = vcmask 80928  }
  0x90   :  { %77 = vst.msk [vmem:[#allocation0] sm:$0x1] %vm76_vm13, %v75_v43   ;;  %vm171_vm13 = vcmask 97328  }
  0x91   :  { %83 = vst.msk [vmem:[#allocation0] sm:$0x1] %vm82_vm14, %v81_v35  }
  0x94   :  { %v93_v46 = vpop.permute.xlu1 %92  }
  0x95   :  { %v157_v47 = vpop.permute.xlu2 %156  }
  0x96   :  { %v87_v45 = vpop.permute.xlu0 %86  }
  0x97   :  { %89 = vst.msk [vmem:[#allocation0] sm:$0x1] %vm88_vm15, %v87_v45  }
  0x98   :  { %95 = vst.msk [vmem:[#allocation0] sm:$0x1] %vm94_vm0, %v93_v46  }
  0x99   :  { %101 = vst.msk [vmem:[#allocation0] sm:$0x1] %vm100_vm1, %v99_v38  }
  0x9c   :  { %v111_v49 = vpop.permute.xlu1 %110  }
  0x9d   :  { %114 = vst.msk [vmem:[#allocation0 + $0x8] sm:$0x1] %vm112_vm4, %v111_v49   ;;  %v176_v50 = vpop.permute.xlu2 %175  }
  0x9e   :  { %v105_v48 = vpop.permute.xlu0 %104  }
  0x9f   :  { %107 = vst.msk [vmem:[#allocation0] sm:$0x1] %vm106_vm2, %v105_v48  }
  0xa0   :  { %120 = vst.msk [vmem:[#allocation0] sm:$0x1] %vm119_vm3, %v118_v41  }
  0xa4   :  { %v131_v52 = vpop.permute.xlu1 %130  }
  0xa5   :  { %133 = vst.msk [vmem:[#allocation0] sm:$0x1] %vm132_vm7, %v131_v52  }
  0xa6   :  { %v124_v51 = vpop.permute.xlu0 %123  }
  0xa7   :  { %127 = vst.msk [vmem:[#allocation0 + $0x8] sm:$0x1] %vm125_vm5, %v124_v51  }
  0xa8   :  { %140 = vst.msk [vmem:[#allocation0 + $0x8] sm:$0x1] %vm138_vm6, %v137_v44  }
  0xac   :  { %v150_v54 = vpop.permute.xlu1 %149  }
  0xad   :  { %153 = vst.msk [vmem:[#allocation0 + $0x8] sm:$0x1] %vm151_vm10, %v150_v54  }
  0xae   :  { %v144_v53 = vpop.permute.xlu0 %143  }
  0xaf   :  { %146 = vst.msk [vmem:[#allocation0] sm:$0x1] %vm145_vm8, %v144_v53  }
  0xb0   :  { %159 = vst.msk [vmem:[#allocation0] sm:$0x1] %vm158_vm9, %v157_v47  }
  0xb4   :  { %v170_v56 = vpop.permute.xlu1 %169  }
  0xb5   :  { %172 = vst.msk [vmem:[#allocation0] sm:$0x1] %vm171_vm13, %v170_v56  }
  0xb6   :  { %v163_v55 = vpop.permute.xlu0 %162  }
  0xb7   :  { %166 = vst.msk [vmem:[#allocation0 + $0x8] sm:$0x1] %vm164_vm11, %v163_v55  }
  0xb8   :  { %179 = vst.msk [vmem:[#allocation0 + $0x8] sm:$0x1] %vm177_vm12, %v176_v50  }
  0xbc   :  { %v182_v58 = vld [vmem:[#allocation0] sm:$0x1] }
  0xbd   :  { %185 = vst [vmem:[%s379_s1] sm:$0x1] %v182_v58 }
  0xbf   :  { %v187_v57 = vld [vmem:[#allocation0 + $0x8] sm:$0x1] }
  0xc0   :  { %220 = vst [vmem:[%s379_s1 + $0x1] sm:$0x1] %v187_v57 }

// kernel: tile.18
= control target key start
LH: loop header
LB: loop body
LE: loop exit
PB: predicated region body
PF: predicated region fallthrough
CT: control target
= control target key end

     0   :  { %s28_s0 = inlined_call_operand.vmem [shape: f32[16], index: 0, kind: input, shape index: {}]   ;;  %s29_s1 = inlined_call_operand.vmem [shape: f32[10,16], index: 1, kind: output, shape index: {}]  }
   0x1   :  { %v4_v0 = vld [vmem:[%s28_s0] ss:$0 sm:$0xff] }
   0x2   :  { %5 = vst [vmem:[%s29_s1] sm:$0xff] %v4_v0 }
   0x3   :  { %8 = vst [vmem:[%s29_s1 + $0x8] sm:$0xff] %v4_v0 }

// kernel: tile.19
= control target key start
LH: loop header
LB: loop body
LE: loop exit
PB: predicated region body
PF: predicated region fallthrough
CT: control target
= control target key end

     0   :  { %s76_s10 = smov 112   ;;  %s77_s11 = smov 80   ;;  %vm4_vm0 = vcmask 130048   ;;  %vm10_vm1 = vcmask 1048448   ;;  %vm16_vm2 = vcmask 917248   ;;  %vm22_vm3 = vcmask 786048   ;;  %s123_s0 = inlined_call_operand.vmem [shape: f32[10,16], index: 0, kind: input, shape index: {}]   ;;  %s124_s1 = inlined_call_operand.vmem [shape: f32[1,160], index: 1, kind: output, shape index: {}]  }
   0x1   :  { %v61_v0 = vld [vmem:[%s123_s0 + $0x7] sm:$0x1]   ;;  %v63_v1 = vld [vmem:[%s123_s0 + $0x5] sm:$0x1]   ;;  %v65_v2 = vld [vmem:[%s123_s0 + $0x3] sm:$0x1]  }
   0x2   :  { %8 = vrot.lane.b32.xlu0 %v61_v0, %s76_s10  ;;  %20 = vrot.lane.b32.xlu1 %v63_v1, %s77_s11  ;;  %s78_s14 = smov 48   ;;  %v62_v3 = vld [vmem:[%s123_s0 + $0x6] sm:$0x1]   ;;  %v64_v4 = vld [vmem:[%s123_s0 + $0x4] sm:$0x1]   ;;  %s79_s19 = smov 96  }
   0x3   :  { %32 = vrot.lane.b32.xlu2 %v65_v2, %s78_s14  ;;  %s80_s20 = smov 64   ;;  %v66_v5 = vld [vmem:[%s123_s0 + $0x2] sm:$0x1]   ;;  %s43_s23 = smov 3  ;;  %vm28_vm4 = vcmask 654848   ;;  %vm34_vm5 = vcmask 523648  }
   0x4   :  { %s81_s24 = smov 32   ;;  %v67_v6 = vld [vmem:[%s123_s0 + $0x1] ss:$8 sm:%s43_s23]   ;;  %s82_s27 = smov 16   ;;  %vm40_vm6 = vcmask 392448   ;;  %vm47_vm7 = vcmask 261248  }
   0x5   :  { %s2_s28 = smov 3 }
   0x6   :  { %v3_v7 = vld [vmem:[%s123_s0] ss:$8 sm:%s2_s28]  }
   0x7   :  { %5 = vst.msk [vmem:[#allocation0] ss:$8 sm:$0x3] %vm4_vm0, %v3_v7  }
   0xa   :  { %14 = vrot.lane.b32.xlu0 %v62_v3, %s79_s19  ;;  %26 = vrot.lane.b32.xlu1 %v64_v4, %s80_s20 }
   0xb   :  { %38 = vrot.lane.b32.xlu2 %v66_v5, %s81_s24 }
  0x12   :  { %45 = vrot.lane.b32.xlu0 %v67_v6, %s82_s27 }
  0x5d   :  { %v33_v8 = vpop.permute.xlu2 %32  }
  0x65   :  { %v39_v9 = vpop.permute.xlu2 %38  }
  0x74   :  { %v9_v10 = vpop.permute.xlu0 %8   ;;  %v21_v11 = vpop.permute.xlu1 %20  }
  0x75   :  { %11 = vst.msk [vmem:[#allocation0] sm:$0x1] %vm10_vm1, %v9_v10  }
  0x7c   :  { %v15_v12 = vpop.permute.xlu0 %14   ;;  %v27_v13 = vpop.permute.xlu1 %26  }
  0x7d   :  { %17 = vst.msk [vmem:[#allocation0] sm:$0x1] %vm16_vm2, %v15_v12  }
  0x7e   :  { %23 = vst.msk [vmem:[#allocation0] sm:$0x1] %vm22_vm3, %v21_v11  }
  0x7f   :  { %29 = vst.msk [vmem:[#allocation0] sm:$0x1] %vm28_vm4, %v27_v13  }
  0x80   :  { %35 = vst.msk [vmem:[#allocation0] sm:$0x1] %vm34_vm5, %v33_v8  }
  0x81   :  { %41 = vst.msk [vmem:[#allocation0] sm:$0x1] %vm40_vm6, %v39_v9  }
  0x84   :  { %v46_v14 = vpop.permute.xlu0 %45  }
  0x85   :  { %48 = vst.msk [vmem:[#allocation0] ss:$8 sm:$0x3] %vm47_vm7, %v46_v14  }
  0x8c   :  { %v51_v15 = vld [vmem:[#allocation0] sm:$0x1]  ;;  %v56_v16 = vld [vmem:[#allocation0 + $0x8] sm:$0x1] }
  0x8d   :  { %54 = vst [vmem:[%s124_s1] sm:$0x1] %v51_v15 }
  0x8e   :  { %68 = vst [vmem:[%s124_s1 + $0x1] sm:$0x1] %v56_v16 }

// kernel: lenet_forward.1
= control target key start
LH: loop header
LB: loop body
LE: loop exit
PB: predicated region body
PF: predicated region fallthrough
CT: control target
= control target key end

     0   :  { %s3459_s0 = inlined_call_operand.vmem [shape: f32[2,32,32], index: 0, kind: input, shape index: {}]   ;;  %s3460_s1 = inlined_call_operand.vmem [shape: f32[5,32,168], index: 1, kind: input, shape index: {}]   ;;  %s3461_s2 = inlined_call_operand.vmem [shape: f32[1,168], index: 2, kind: input, shape index: {}]   ;;  %s3462_s3 = inlined_call_operand.vmem [shape: f32[14,28], index: 3, kind: input, shape index: {}]   ;;  %s3463_s4 = inlined_call_operand.vmem [shape: f32[168,84], index: 4, kind: input, shape index: {}]   ;;  %s3464_s5 = inlined_call_operand.vmem [shape: f32[5,84,160], index: 5, kind: input, shape index: {}]   ;;  %s3465_s6 = inlined_call_operand.vmem [shape: f32[1,160], index: 6, kind: input, shape index: {}]   ;;  %s3466_s7 = inlined_call_operand.vmem [shape: f32[5,10], index: 7, kind: input, shape index: {}]   ;;  %s3467_s8 = inlined_call_operand.vmem [shape: f32[160,80], index: 8, kind: input, shape index: {}]   ;;  %s3468_s9 = inlined_call_operand.vmem [shape: f32[5,80,120], index: 9, kind: input, shape index: {}]   ;;  %s3469_s10 = inlined_call_operand.vmem [shape: f32[1,120], index: 10, kind: input, shape index: {}]   ;;  %s3470_s11 = inlined_call_operand.vmem [shape: f32[120,84], index: 11, kind: input, shape index: {}]   ;;  %s3471_s12 = inlined_call_operand.vmem [shape: f32[1,84], index: 12, kind: input, shape index: {}]   ;;  %s3472_s13 = inlined_call_operand.vmem [shape: f32[84,128], index: 13, kind: input, shape index: {}]   ;;  %s3473_s14 = inlined_call_operand.vmem [shape: f32[1,128], index: 14, kind: input, shape index: {}]   ;;  %s3474_s15 = inlined_call_operand.hbm [shape: f32[2,1,128], index: 15, kind: output, shape index: {}]  }
   0x1   :  { %3481 = sst [smem:[#allocation13_spill]] %s3459_s0 }
   0x2   :  { %20 = vsyncpa [#allocation5], 0 }
   0x3   :  { %22 = vsyncpa [#allocation5 + $0x1], 0  ;;  %s2426_s18 = smov 0   ;;  %s2428_s19 = smov 0  }
   0x4   :  { %s2430_s20 = smov 0   ;;  %s2432_s21 = smov 0  }
   0x5 LB: > { %3482 = sst [smem:[#allocation7_spill]] %s2332_s18  ;;  %s2447_s22 = sadd.s32 4294967295, %s2344_s21   ;;  %s2344_s21 = sphi %s2432_s21, %s3494_s21   ;;  %s2340_s20 = sphi %s2430_s20, %s3496_s20   ;;  %s2336_s19 = sphi %s2428_s19, %s3498_s19   ;;  %s2332_s18 = sphi %s2426_s18, %s3497_s18  }
   0x6   : > { %3483 = sst [smem:[#allocation8_spill]] %s2340_s20  ;;  %s1979_s23 = sadd.s32 4294967294, %s2344_s21  }
   0x7   : > { %3484 = sst [smem:[#allocation9_spill]] %s2344_s21  ;;  %s2451_s24 = sadd.s32 1, %s2344_s21  }
   0x8   : > { %3485 = sst [smem:[#allocation10_spill]] %s2451_s24  ;;  %s355_s25 = sadd.s32 1, %s2340_s20 }
   0x9   : > { %s352_s26 = ssub.s32 %s2344_s21, %s2451_s24  ;;  %p365_p0 = scmp.ne.s32.totalorder %s2340_s20, %s2336_s19 }
   0xa   : > { %p353_p1 = scmp.eq.s32.totalorder %s352_s26, 0  ;;  %p366_p2 = scmp.eq.s32.totalorder %s2447_s22, 1 }
   0xb   : > { %p371_p3 = scmp.ne.s32.totalorder %s2336_s19, %s2332_s18  ;;  %p372_p4 = scmp.eq.s32.totalorder %s1979_s23, 1 }
   0xc   : > { %s2462_s27 = scalar_select %p353_p1, %s2340_s20, %s355_s25  }
   0xd   : > { %p2464_p5 = por %p366_p2, %p365_p0  ;;  %p2468_p6 = por %p372_p4, %p371_p3 }
   0xe   : > { %3486 = sst [smem:[#allocation11_spill]] %s2462_s27  ;;  %p1982_p7 = scmp.ge.s32.totalorder %s2344_s21, 1 }
   0xf   : > { %s3488_s29 = scalar_select %p2468_p6, 1, 0 }
  0x10   : > { %p440_p8 = scmp.lt.s32.totalorder %s2344_s21, 3 }
  0x11   : > { %3489 = sst [smem:[#allocation12_spill]] %s3488_s29 }
  0x12   : > { %p441_p9 = pnand %p1982_p7, %p440_p8 }
  0x13   : > { %p487_p10 = scmp.lt.s32.totalorder (!%p441_p9), %s2447_s22, 1  ;;  %s3490_s0 = sld [smem:[#allocation13_spill]] (!%p441_p9) }
  0x14   : > { %444 = sbr.rel (%p441_p9) target bundleno = 1421 (0x58d), region = 80  ;;  %s1920_s30 = scalar_lea.hbm (!%p441_p9), %s3474_s15, %s2447_s22 }
  0x15   : > { %s1924_s23 = sshll.u32 (!%p441_p9), %s1920_s30, 4  ;;  %s2302_s24 = scalar_lea.hbm (!%p441_p9), %s3474_s15, 2  ;;  %s1925_s23 = int_to_ptr.hbm [resolvable:$true] %s1924_s23 }
  0x16   : > { %s2296_s18 = sshra.s32 (!%p441_p9), %s1925_s23, 4  ;;  %s2297_s18 = int_to_ptr.hbm [resolvable:$true] %s2296_s18 }
  0x17   : > { %p2303_p0 = scmp.lt.s32.totalorder (!%p441_p9), %s2297_s18, %s3474_s15 }
  0x19   : > { %v1991_v0 = vld [vmem:[%s3460_s1 + $0x70] sm:$0xff]  ;;  %v1992_v1 = vld [vmem:[%s3460_s1 + $0x78] sm:$0xff]  ;;  %v1989_v3 = vld [vmem:[%s3460_s1 + $0x60] sm:$0xff]  ;;  %s488_s27 = scalar_select %p487_p10, %s2447_s22, 1  ;;  %vm517_vm0 = vcmask 261120   ;;  %vm962_vm1 = vcmask 1043456  }
  0x1a   : > { %v503_v2 = vld [vmem:[%s3460_s1 + $0x38] sm:$0xff]  ;;  %542 = vmatpush.msra.mxu0 %v1991_v0  ;;  %571 = vmatpush.msra.mxu1 %v1992_v1  ;;  %v1990_v4 = vld [vmem:[%s3460_s1 + $0x68] sm:$0xff]  ;;  %v1987_v6 = vld [vmem:[%s3460_s1 + $0x50] sm:$0xff]  ;;  %vm955_vm2 = vcmask 228352   ;;  %vm1036_vm3 = vcmask 326656   ;;  %vm1089_vm4 = vcmask 687104  }
  0x1b   : > { %v501_v5 = vld [vmem:[%s3460_s1 + $0x28] sm:$0xff]  ;;  %641 = vmatpush.msra.mxu3 %v503_v2  ;;  %v1988_v7 = vld [vmem:[%s3460_s1 + $0x58] sm:$0xff]  ;;  %v502_v8 = vld [vmem:[%s3460_s1 + $0x30] sm:$0xff]  ;;  %s2238_s26 = sshll.u32 %s488_s27, 5  ;;  %vm1091_vm5 = vcmask 685056   ;;  %vm1538_vm6 = vcmask 1041408  }
  0x1c   : > { %543 = vmatpush.msra.mxu0 %v1989_v3  ;;  %572 = vmatpush.msra.mxu1 %v1990_v4  ;;  %v499_v9 = vld [vmem:[%s3460_s1 + $0x18] sm:$0xff]  ;;  %v1985_v10 = vld [vmem:[%s3460_s1 + $0x40] sm:$0xff]  ;;  %v1986_v11 = vld [vmem:[%s3460_s1 + $0x48] sm:$0xff]  ;;  %s2521_s29 = scalar_lea.vmem %s3490_s0, %s2238_s26  ;;  %vm1534_vm7 = vcmask 80896   ;;  %vm1648_vm8 = vcmask 651264   ;;  %vm1673_vm9 = vcmask 654336  }
  0x1d   : > { %642 = vmatpush.msra.mxu3 %v501_v5  ;;  %2239 = vmatpush.msra.mxu2 %v502_v8  ;;  %v500_v12 = vld [vmem:[%s3460_s1 + $0x20] sm:$0xff]  ;;  %v497_v13 = vld [vmem:[%s3460_s1 + $0x8] sm:$0xff]  ;;  %v498_v16 = vld [vmem:[%s3460_s1 + $0x10] sm:$0xff]  ;;  %vm1847_vm10 = vcmask 982016   ;;  %s2298_s26 = scalar_lea.hbm %s2297_s18, 1 }
  0x1e   : > { %544 = vmatpush.msra.mxu0 %v1987_v6  ;;  %573 = vmatpush.msra.mxu1 %v1988_v7  ;;  %v504_v14 = vld [vmem:[%s2521_s29 + $0x1] sm:$0xff]  ;;  %v2015_v17 = vld [vmem:[%s3460_s1 + $0xb0] sm:$0xff]  ;;  %v2032_v21 = vld [vmem:[%s3460_s1 + $0xf8] sm:$0xff]  ;;  %p2299_p11 = scmp.ne.s32.totalorder %s2297_s18, %s2298_s26  ;;  %p2304_p1 = scmp.lt.s32.totalorder %s2302_s24, %s2298_s26 }
  0x1f   : > { %643 = vmatpush.msra.mxu3 %v499_v9  ;;  %2240 = vmatpush.msra.mxu2 %v500_v12  ;;  %v2525_v15 = vld [vmem:[%s2521_s29] sm:$0xff]  ;;  %v493_v19 = vld [vmem:[%s2521_s29 + $0x8] sm:$0xff]  ;;  %v2031_v22 = vld [vmem:[%s3460_s1 + $0xf0] sm:$0xff] }
  0x20   : > { %545 = vmatpush.msra.mxu0 %v1985_v10  ;;  %574 = vmatpush.msra.mxu1 %v1986_v11  ;;  %v496_v18 = vld [vmem:[%s3460_s1] sm:$0xff]  ;;  %v2011_v23 = vld [vmem:[%s3460_s1 + $0x90] sm:$0xff]  ;;  %v2030_v24 = vld [vmem:[%s3460_s1 + $0xe8] sm:$0xff]  ;;  %p2300_p12 = pnand %p2299_p11, %p2464_p5  ;;  %p2305_p2 = por %p2304_p1, %p2303_p0 }
  0x21   : > { %644 = vmatpush.msra.mxu3 %v497_v13  ;;  %1993 = vmatmul.msk.f32.vlgmr.msra.gmra.mxu0 %vm517_vm0, %v504_v14  ;;  %v2013_v20 = vld [vmem:[%s3460_s1 + $0xa0] sm:$0xff]  ;;  %v505_v25 = vld [vmem:[%s2521_s29 + $0x9] sm:$0xff]  ;;  %v2016_v29 = vld [vmem:[%s3460_s1 + $0xb8] sm:$0xff] }
  0x22   : > { %1997 = vmatmul.msk.f32.vlgmr.msra.gmra.mxu1 %vm517_vm0, %v504_v14  ;;  %2005 = vmatmul.msk.f32.vlgmr.msra.gmra.mxu3 %vm517_vm0, %v2525_v15  ;;  %v2029_v26 = vld [vmem:[%s3460_s1 + $0xe0] sm:$0xff]  ;;  %v2027_v27 = vld [vmem:[%s3460_s1 + $0xd0] sm:$0xff]  ;;  %v2028_v31 = vld [vmem:[%s3460_s1 + $0xd8] sm:$0xff]  ;;  %p2301_p13 = pneg %p2300_p12 }
  0x23   : > { %2241 = vmatpush.msra.mxu2 %v498_v16  ;;  %612 = vmatpush.msrb.mxu1 %v502_v8  ;;  %v2009_v28 = vld [vmem:[%s3460_s1 + $0x80] sm:$0xff]  ;;  %v494_v32 = vld [vmem:[%s2521_s29 + $0x10] sm:$0xff]  ;;  %v2014_v33 = vld [vmem:[%s3460_s1 + $0xa8] sm:$0xff] }
  0x24   : > { %695 = vmatpush.msrb.mxu0 %v2015_v17  ;;  %815 = vmatpush.msrb.mxu3 %v2032_v21  ;;  %v2025_v30 = vld [vmem:[%s3460_s1 + $0xc0] sm:$0xff]  ;;  %v2026_v34 = vld [vmem:[%s3460_s1 + $0xc8] sm:$0xff]  ;;  %v2012_v35 = vld [vmem:[%s3460_s1 + $0x98] sm:$0xff]  ;;  %p2306_p3 = pnand %p2305_p2, %p2301_p13 }
  0x25   : > { %2242 = vmatpush.msra.mxu2 %v496_v18  ;;  %613 = vmatpush.msrb.mxu1 %v500_v12  ;;  %v506_v36 = vld [vmem:[%s2521_s29 + $0x11] sm:$0xff]  ;;  %v2010_v37 = vld [vmem:[%s3460_s1 + $0x88] sm:$0xff]  ;;  %v507_v39 = vld [vmem:[%s2521_s29 + $0x19] sm:$0xf] }
  0x26   : > { %2002 = vmatmul.msk.f32.vlgmr.msra.gmra.mxu2 %vm517_vm0, %v493_v19  ;;  %696 = vmatpush.msrb.mxu0 %v2013_v20  ;;  %v495_v38 = vld [vmem:[%s2521_s29 + $0x18] sm:$0xf]  ;;  %v2047_v40 = vld [vmem:[%s3460_s1 + $0x130] sm:$0xff]  ;;  %v2045_v41 = vld [vmem:[%s3460_s1 + $0x120] sm:$0xff] }
  0x27   : > { %786 = vmatpush.msrb.mxu2 %v2031_v22  ;;  %614 = vmatpush.msrb.mxu1 %v498_v16  ;;  %v749_v42 = vld [vmem:[%s2521_s29 + $0x3] sm:$0xff]  ;;  %v2043_v43 = vld [vmem:[%s3460_s1 + $0x110] sm:$0xff]  ;;  %v2048_v46 = vld [vmem:[%s3460_s1 + $0x138] sm:$0xff] }
  0x28   : > { %697 = vmatpush.msrb.mxu0 %v2011_v23  ;;  %816 = vmatpush.msrb.mxu3 %v2030_v24  ;;  %v658_v44 = vld [vmem:[%s2521_s29 + $0x2] sm:$0xff]  ;;  %v750_v48 = vld [vmem:[%s2521_s29 + $0xb] sm:$0xff]  ;;  %v2044_v49 = vld [vmem:[%s3460_s1 + $0x118] sm:$0xff] }
  0x29   : > { %1994 = vmatmul.msk.f32.gmra.mxu0 %vm517_vm0, %v505_v25  ;;  %787 = vmatpush.msrb.mxu2 %v2029_v26  ;;  %v2041_v45 = vld [vmem:[%s3460_s1 + $0x100] sm:$0xff]  ;;  %v2046_v47 = vld [vmem:[%s3460_s1 + $0x128] sm:$0xff]  ;;  %v751_v52 = vld [vmem:[%s2521_s29 + $0x13] sm:$0xff] }
  0x2a   : > { %1998 = vmatmul.msk.f32.gmra.mxu1 %vm517_vm0, %v505_v25  ;;  %2006 = vmatmul.msk.f32.gmra.mxu3 %vm517_vm0, %v493_v19  ;;  %v659_v50 = vld [vmem:[%s2521_s29 + $0xa] sm:$0xff]  ;;  %v660_v53 = vld [vmem:[%s2521_s29 + $0x12] sm:$0xff]  ;;  %v752_v54 = vld [vmem:[%s2521_s29 + $0x1b] sm:$0xf] }
  0x2b   : > { %788 = vmatpush.msrb.mxu2 %v2027_v27  ;;  %615 = vmatpush.msrb.mxu1 %v496_v18  ;;  %v2042_v51 = vld [vmem:[%s3460_s1 + $0x108] sm:$0xff]  ;;  %v661_v55 = vld [vmem:[%s2521_s29 + $0x1a] sm:$0xf] }
  0x2c   : > { %698 = vmatpush.msrb.mxu0 %v2009_v28  ;;  %817 = vmatpush.msrb.mxu3 %v2028_v31  ;;  %v840_v56 = vld [vmem:[%s2521_s29 + $0x4] sm:$0xff]  ;;  %v841_v57 = vld [vmem:[%s2521_s29 + $0xc] sm:$0xff]  ;;  %v842_v58 = vld [vmem:[%s2521_s29 + $0x14] sm:$0xff] }
  0x2d   : > { %724 = vmatpush.msra.mxu1 %v2016_v29  ;;  %789 = vmatpush.msrb.mxu2 %v2025_v30  ;;  %v843_v59 = vld [vmem:[%s2521_s29 + $0x1c] sm:$0xf]  ;;  %s485_s29 = sand.u32 1, %s2336_s19  }
  0x2e   : > { %2003 = vmatmul.msk.f32.gmra.mxu2 %vm517_vm0, %v494_v32  ;;  %818 = vmatpush.msrb.mxu3 %v2026_v34  ;;  %s486_s21 = scalar_lea.vmem [#allocation4], %s485_s29  ;;  %s1912_s25 = scalar_lea.sflag [#allocation5], %s485_s29 }
  0x2f   : > { %725 = vmatpush.msra.mxu1 %v2014_v33  ;;  %877 = vmatpush.msra.mxu0 %v2047_v40  ;;  %s1922_s17 = sshll.u32 %s486_s21, 4  ;;  %s1923_s17 = int_to_ptr.vmem [resolvable:$true] %s1922_s17 }
  0x31   : > { %726 = vmatpush.msra.mxu1 %v2012_v35  ;;  %1995 = vmatmul.msk.f32.gmra.mxu0 %vm517_vm0, %v506_v36 }
  0x32   : > { %1999 = vmatmul.msk.f32.gmra.mxu1 %vm517_vm0, %v506_v36  ;;  %2007 = vmatmul.msk.f32.gmra.mxu3 %vm517_vm0, %v494_v32 }
  0x33   : > { %727 = vmatpush.msra.mxu1 %v2010_v37  ;;  %878 = vmatpush.msra.mxu0 %v2045_v41  ;;  %v931_v41 = vld [vmem:[%s3461_s2] sm:$0x3] }
  0x35   : > { %879 = vmatpush.msra.mxu0 %v2043_v43 }
  0x36   : > { %2004 = vmatmul.msk.f32.gmra.mxu2 %vm517_vm0, %v495_v38 }
  0x37   : > { %880 = vmatpush.msra.mxu0 %v2041_v45  ;;  %v1030_v45 = vld [vmem:[%s3463_s4 + $0x78] sm:$0xff] }
  0x39   : > { %1996 = vmatmul.msk.f32.gmra.mxu0 %vm517_vm0, %v507_v39 }
  0x3a   : > { %2000 = vmatmul.msk.f32.gmra.mxu1 %vm517_vm0, %v507_v39  ;;  %2008 = vmatmul.msk.f32.gmra.mxu3 %vm517_vm0, %v495_v38 }
  0x3e   : > { %2033 = vmatmul.msk.f32.vlgmr.msrb.gmra.mxu2 %vm517_vm0, %v749_v42 }
  0x41   : > { %2017 = vmatmul.msk.f32.vlgmr.msrb.gmra.mxu0 %vm517_vm0, %v658_v44 }
  0x42   : > { %2001 = vmatmul.msk.f32.vlgmr.msrb.gmra.mxu1 %vm517_vm0, %v2525_v15  ;;  %2037 = vmatmul.msk.f32.vlgmr.msrb.gmra.mxu3 %vm517_vm0, %v749_v42 }
  0x43   : > { %906 = vmatpush.msrb.mxu1 %v2048_v46  ;;  %v1029_v46 = vld [vmem:[%s3463_s4 + $0x70] sm:$0xff]  ;;  %1043 = vmatpush.msrb.mxu0 %v1030_v45  ;;  %v1015_v45 = vld [vmem:[%s3463_s4] sm:$0xff] }
  0x45   : > { %907 = vmatpush.msrb.mxu1 %v2046_v47  ;;  %1044 = vmatpush.msrb.mxu0 %v1029_v46  ;;  %v1115_v46 = vld [vmem:[%s3464_s5 + $0xa0] sm:$0xf] }
  0x46   : > { %2034 = vmatmul.msk.f32.gmra.mxu2 %vm517_vm0, %v750_v48 }
  0x47   : > { %908 = vmatpush.msrb.mxu1 %v2044_v49 }
  0x49   : > { %2018 = vmatmul.msk.f32.gmra.mxu0 %vm517_vm0, %v659_v50  ;;  %909 = vmatpush.msrb.mxu1 %v2042_v51 }
  0x4a   : > { %2021 = vmatmul.msk.f32.vlgmr.msra.gmra.mxu1 %vm517_vm0, %v658_v44  ;;  %2038 = vmatmul.msk.f32.gmra.mxu3 %vm517_vm0, %v750_v48 }
  0x4e   : > { %2035 = vmatmul.msk.f32.gmra.mxu2 %vm517_vm0, %v751_v52 }
  0x51   : > { %2019 = vmatmul.msk.f32.gmra.mxu0 %vm517_vm0, %v660_v53 }
  0x52   : > { %2022 = vmatmul.msk.f32.gmra.mxu1 %vm517_vm0, %v659_v50  ;;  %2039 = vmatmul.msk.f32.gmra.mxu3 %vm517_vm0, %v751_v52  ;;  %v933_v50 = vperm.slane %v931_v41, 0 }
  0x56   : > { %2036 = vmatmul.msk.f32.gmra.mxu2 %vm517_vm0, %v752_v54 }
  0x59   : > { %2020 = vmatmul.msk.f32.gmra.mxu0 %vm517_vm0, %v661_v55 }
  0x5a   : > { %2023 = vmatmul.msk.f32.gmra.mxu1 %vm517_vm0, %v660_v53  ;;  %2040 = vmatmul.msk.f32.gmra.mxu3 %vm517_vm0, %v752_v54  ;;  %v1028_v54 = vld [vmem:[%s3463_s4 + $0x68] sm:$0xff] }
  0x5b   : > { %1045 = vmatpush.msrb.mxu0 %v1028_v54  ;;  %v2082_v54 = vld [vmem:[%s3464_s5 + $0x138] sm:$0xff] }
  0x61   : > { %2049 = vmatmul.msk.f32.vlgmr.msra.gmra.mxu0 %vm517_vm0, %v840_v56 }
  0x62   : > { %2024 = vmatmul.msk.f32.gmra.mxu1 %vm517_vm0, %v661_v55 }
  0x69   : > { %2050 = vmatmul.msk.f32.gmra.mxu0 %vm517_vm0, %v841_v57 }
  0x6a   : > { %2053 = vmatmul.msk.f32.vlgmr.msrb.gmra.mxu1 %vm517_vm0, %v840_v56 }
  0x71   : > { %2051 = vmatmul.msk.f32.gmra.mxu0 %vm517_vm0, %v842_v58 }
  0x72   : > { %2054 = vmatmul.msk.f32.gmra.mxu1 %vm517_vm0, %v841_v57 }
  0x79   : > { %2052 = vmatmul.msk.f32.gmra.mxu0 %vm517_vm0, %v843_v59 }
  0x7a   : > { %2055 = vmatmul.msk.f32.gmra.mxu1 %vm517_vm0, %v842_v58 }
  0x82   : > { %2056 = vmatmul.msk.f32.gmra.mxu1 %vm517_vm0, %v843_v59 }
  0x9e   : > { %v547_v60 = vpop.f32.mrf.mxu0 }
  0x9f   : > { %v2665_v61 = vpop.f32.mrf.mxu1 }
  0xa5   : > { %v646_v4 = vpop.f32.mrf.mxu3 }
  0xa6   : > { %v550_v62 = vpop.f32.mrf.mxu0 }
  0xa7   : > { %v579_v63 = vpop.f32.mrf.mxu1 }
  0xa9   : > { %v620_v2 = vpop.f32.mrf.mxu2 }
  0xaa   : > { %v621_v30 = vadd.f32 %v620_v2, %v550_v62  ;;  %v1027_v62 = vld [vmem:[%s3463_s4 + $0x60] sm:$0xff] }
  0xab   : > { %1046 = vmatpush.msrb.mxu0 %v1027_v62  ;;  %v2077_v62 = vld [vmem:[%s3464_s5 + $0x110] sm:$0xff] }
  0xad   : > { %v649_v9 = vpop.f32.mrf.mxu3 }
  0xae   : > { %v553_v0 = vpop.f32.mrf.mxu0  ;;  %v650_v55 = vadd.f32 %v649_v9, %v579_v63  ;;  %v1026_v63 = vld [vmem:[%s3463_s4 + $0x58] sm:$0xff] }
  0xaf   : > { %v582_v1 = vpop.f32.mrf.mxu1  ;;  %1047 = vmatpush.msrb.mxu0 %v1026_v63  ;;  %v1103_v63 = vld [vmem:[%s3464_s5 + $0x40] sm:$0xff] }
  0xb1   : > { %v623_v8 = vpop.f32.mrf.mxu2 }
  0xb2   : > { %v624_v28 = vadd.f32 %v623_v8, %v553_v0  ;;  %v647_v0 = vadd.f32 %v646_v4, %v2665_v61  ;;  %v1025_v61 = vld [vmem:[%s3463_s4 + $0x50] sm:$0xff] }
  0xb3   : > { %1048 = vmatpush.msrb.mxu0 %v1025_v61 }
  0xb5   : > { %v652_v13 = vpop.f32.mrf.mxu3 }
  0xb6   : > { %v556_v3 = vpop.f32.mrf.mxu0  ;;  %v653_v47 = vadd.f32 %v652_v13, %v582_v1 }
  0xb7   : > { %v585_v5 = vpop.f32.mrf.mxu1 }
  0xb9   : > { %v626_v12 = vpop.f32.mrf.mxu2 }
  0xba   : > { %v627_v31 = vadd.f32 %v626_v12, %v556_v3 }
  0xbd   : > { %v655_v17 = vpop.f32.mrf.mxu3 }
  0xbe   : > { %v700_v6 = vpop.f32.mrf.mxu0  ;;  %v656_v56 = vadd.f32 %v655_v17, %v585_v5  ;;  %v934_v17 = vperm.slane %v931_v41, 1  ;;  %v1018_v41 = vld [vmem:[%s3463_s4 + $0x18] sm:$0xff] }
  0xbf   : > { %v617_v7 = vpop.f32.mrf.mxu1 }
  0xc0   : > { %v618_v32 = vadd.f32 %v617_v7, %v547_v60 }
  0xc1   : > { %v791_v16 = vpop.f32.mrf.mxu2 }
  0xc2   : > { %v741_v39 = vadd.f32 %v700_v6, %v618_v32 }
  0xc4   : > { %v832_v49 = vadd.f32 %v791_v16, %v741_v39  ;;  %v1019_v39 = vld [vmem:[%s3463_s4 + $0x20] sm:$0xff] }
  0xc5   : > { %v2667_v20 = vpop.f32.mrf.mxu3 }
  0xc6   : > { %v703_v10 = vpop.f32.mrf.mxu0 }
  0xc7   : > { %v729_v11 = vpop.f32.mrf.mxu1  ;;  %v743_v35 = vadd.f32 %v703_v10, %v621_v30 }
  0xc8   : > { %v742_v5 = vadd.f32 %v729_v11, %v647_v0  ;;  %v1024_v11 = vld [vmem:[%s3463_s4 + $0x48] sm:$0xff]  ;;  %v2115_v0 = vld [vmem:[%s3464_s5 + $0x1e0] sm:$0xff] }
  0xc9   : > { %v794_v21 = vpop.f32.mrf.mxu2  ;;  %1049 = vmatpush.msrb.mxu0 %v1024_v11  ;;  %v2072_v11 = vld [vmem:[%s3464_s5 + $0xe8] sm:$0xff] }
  0xca   : > { %v834_v42 = vadd.f32 %v794_v21, %v743_v35  ;;  %v833_v16 = vadd.f32 %v2667_v20, %v742_v5  ;;  %v953_v20 = vld [vmem:[%s3462_s3] sm:$0xff]  ;;  %v1020_v35 = vld [vmem:[%s3463_s4 + $0x28] sm:$0xff]  ;;  %v1101_v5 = vld [vmem:[%s3464_s5 + $0x30] sm:$0xff] }
  0xcd   : > { %v823_v25 = vpop.f32.mrf.mxu3 }
  0xce   : > { %v706_v14 = vpop.f32.mrf.mxu0 }
  0xcf   : > { %v732_v15 = vpop.f32.mrf.mxu1  ;;  %v745_v33 = vadd.f32 %v706_v14, %v624_v28  ;;  %v1022_v28 = vld [vmem:[%s3463_s4 + $0x38] sm:$0xff] }
  0xd0   : > { %v744_v1 = vadd.f32 %v732_v15, %v650_v55  ;;  %v2119_v55 = vld [vmem:[%s3464_s5 + $0x200] sm:$0xf] }
  0xd1   : > { %v797_v27 = vpop.f32.mrf.mxu2 }
  0xd2   : > { %v836_v40 = vadd.f32 %v797_v27, %v745_v33  ;;  %v835_v4 = vadd.f32 %v823_v25, %v744_v1  ;;  %v1035_v27 = vld [vmem:[%s3463_s4 + $0xa0] sm:$0xff]  ;;  %v2078_v1 = vld [vmem:[%s3464_s5 + $0x118] sm:$0xff] }
  0xd5   : > { %v826_v37 = vpop.f32.mrf.mxu3 }
  0xd6   : > { %v709_v18 = vpop.f32.mrf.mxu0 }
  0xd7   : > { %v735_v19 = vpop.f32.mrf.mxu1  ;;  %v747_v36 = vadd.f32 %v709_v18, %v627_v31  ;;  %v1021_v31 = vld [vmem:[%s3463_s4 + $0x30] sm:$0xff] }
  0xd8   : > { %v746_v57 = vadd.f32 %v735_v19, %v653_v47  ;;  %v1113_v47 = vld [vmem:[%s3464_s5 + $0x90] sm:$0xff] }
  0xd9   : > { %v800_v38 = vpop.f32.mrf.mxu2 }
  0xda   : > { %v838_v43 = vadd.f32 %v800_v38, %v747_v36  ;;  %v837_v8 = vadd.f32 %v826_v37, %v746_v57  ;;  %v1032_v37 = vld [vmem:[%s3463_s4 + $0x88] sm:$0xff]  ;;  %v2079_v57 = vld [vmem:[%s3464_s5 + $0x120] sm:$0xff] }
  0xdd   : > { %v829_v3 = vpop.f32.mrf.mxu3 }
  0xde   : > { %v882_v22 = vpop.f32.mrf.mxu0 }
  0xdf   : > { %v738_v23 = vpop.f32.mrf.mxu1  ;;  %v923_v58 = vadd.f32 %v882_v22, %v832_v49  ;;  %v1023_v22 = vld [vmem:[%s3463_s4 + $0x40] sm:$0xff]  ;;  %v2086_v49 = vld [vmem:[%s3464_s5 + $0x158] sm:$0xf] }
  0xe0   : > { %v748_v2 = vadd.f32 %v738_v23, %v656_v56  ;;  %1050 = vmatpush.msrb.mxu0 %v1023_v22  ;;  %2090 = vmatpush.msk.msra.mxu1 %vm962_vm1, %v2086_v49  ;;  %v1109_v56 = vld [vmem:[%s3464_s5 + $0x70] sm:$0xff]  ;;  %v2107_v22 = vld [vmem:[%s3464_s5 + $0x1a0] sm:$0xff] }
  0xe1   : > { %v937_v9 = vadd.f32 %v933_v50, %v923_v58  ;;  %v2080_v58 = vld [vmem:[%s3464_s5 + $0x128] sm:$0xff]  ;;  %v2171_v49 = vld [vmem:[%s3464_s5 + $0x340] sm:$0xff] }
  0xe2   : > { %v839_v12 = vadd.f32 %v829_v3, %v748_v2  ;;  %1051 = vmatpush.msrb.mxu0 %v1022_v28  ;;  %v2113_v2 = vld [vmem:[%s3464_s5 + $0x1d0] sm:$0xff]  ;;  %v2066_v28 = vld [vmem:[%s3464_s5 + $0xb8] sm:$0xff] }
  0xe3   : > { %v945_v21 = vmax.f32 %v937_v9, 0.0  ;;  %v1105_v3 = vld [vmem:[%s3464_s5 + $0x50] sm:$0xff] }
  0xe4   : > { %1052 = vmatpush.msrb.mxu0 %v1021_v31  ;;  %v2120_v31 = vld [vmem:[%s3464_s5 + $0x208] sm:$0xf] }
  0xe6   : > { %v885_v24 = vpop.f32.mrf.mxu0  ;;  %1053 = vmatpush.msrb.mxu0 %v1020_v35  ;;  %v2118_v35 = vld [vmem:[%s3464_s5 + $0x1f8] sm:$0xff] }
  0xe7   : > { %v2669_v26 = vpop.f32.mrf.mxu1  ;;  %v925_v51 = vadd.f32 %v885_v24, %v834_v42  ;;  %v1031_v42 = vld [vmem:[%s3463_s4 + $0x80] sm:$0xff] }
  0xe8   : > { %v924_v23 = vadd.f32 %v2669_v26, %v833_v16  ;;  %v1034_v26 = vld [vmem:[%s3463_s4 + $0x98] sm:$0xff]  ;;  %1054 = vmatpush.msrb.mxu0 %v1019_v39  ;;  %v1097_v16 = vld [vmem:[%s3464_s5 + $0x10] sm:$0xff]  ;;  %v2116_v39 = vld [vmem:[%s3464_s5 + $0x1e8] sm:$0xff] }
  0xe9   : > { %v939_v6 = vadd.f32 %v933_v50, %v925_v51  ;;  %v1111_v51 = vld [vmem:[%s3464_s5 + $0x80] sm:$0xff] }
  0xea   : > { %v938_v32 = vadd.f32 %v934_v17, %v924_v23  ;;  %1055 = vmatpush.msrb.mxu0 %v1018_v41  ;;  %v2067_v23 = vld [vmem:[%s3464_s5 + $0xc0] sm:$0xff] }
  0xeb   : > { %v947_v14 = vmax.f32 %v939_v6, 0.0  ;;  %v2075_v6 = vld [vmem:[%s3464_s5 + $0x100] sm:$0xff] }
  0xec   : > { %v946_v38 = vmax.f32 %v938_v32, 0.0  ;;  %v2143_v32 = vld [vmem:[%s3464_s5 + $0x290] sm:$0xff]  ;;  %v2175_v41 = vld [vmem:[%s3464_s5 + $0x360] sm:$0xf] }
  0xee   : > { %v888_v29 = vpop.f32.mrf.mxu0 }
  0xef   : > { %v914_v34 = vpop.f32.mrf.mxu1  ;;  %v927_v44 = vadd.f32 %v888_v29, %v836_v40  ;;  %v954_v40 = vld [vmem:[%s3462_s3 + $0x8] sm:$0x3f] }
  0xf0   : > { %v926_v18 = vadd.f32 %v914_v34, %v835_v4  ;;  %v1033_v34 = vld [vmem:[%s3463_s4 + $0x90] sm:$0xff] }
  0xf1   : > { %v941_v59 = vadd.f32 %v933_v50, %v927_v44  ;;  %v1016_v44 = vld [vmem:[%s3463_s4 + $0x8] sm:$0xff]  ;;  %v2073_v4 = vld [vmem:[%s3464_s5 + $0xf0] sm:$0xff] }
  0xf2   : > { %v940_v29 = vadd.f32 %v934_v17, %v926_v18  ;;  %v2069_v18 = vld [vmem:[%s3464_s5 + $0xd0] sm:$0xff] }
  0xf3   : > { %v949_v10 = vmax.f32 %v941_v59, 0.0  ;;  %v2117_v59 = vld [vmem:[%s3464_s5 + $0x1f0] sm:$0xff] }
  0xf4   : > { %v948_v36 = vmax.f32 %v940_v29, 0.0  ;;  %v2145_v29 = vld [vmem:[%s3464_s5 + $0x2a0] sm:$0xff] }
  0xf6   : > { %v891_v48 = vpop.f32.mrf.mxu0 }
  0xf7   : > { %v929_v52 = vadd.f32 %v891_v48, %v838_v43  ;;  %v917_v53 = vpop.f32.mrf.mxu1  ;;  %v1017_v43 = vld [vmem:[%s3463_s4 + $0x10] sm:$0xff] }
  0xf8   : > { %v928_v13 = vadd.f32 %v917_v53, %v837_v8  ;;  %1056 = vmatpush.msrb.mxu0 %v1017_v43  ;;  %v2085_v48 = vld [vmem:[%s3464_s5 + $0x150] sm:$0xf]  ;;  %v2114_v43 = vld [vmem:[%s3464_s5 + $0x1d8] sm:$0xff] }
  0xf9   : > { %v943_v60 = vadd.f32 %v933_v50, %v929_v52  ;;  %v2083_v50 = vld [vmem:[%s3464_s5 + $0x140] sm:$0xff]  ;;  %v2084_v52 = vld [vmem:[%s3464_s5 + $0x148] sm:$0xff]  ;;  %v2081_v53 = vld [vmem:[%s3464_s5 + $0x130] sm:$0xff] }
  0xfa   : > { %v942_v24 = vadd.f32 %v934_v17, %v928_v13  ;;  %1057 = vmatpush.msrb.mxu0 %v1016_v44  ;;  %1183 = vmatpush.msra.mxu1 %v2084_v52  ;;  %v1099_v13 = vld [vmem:[%s3464_s5 + $0x20] sm:$0xff] }
  0xfb   : > { %v951_v7 = vmax.f32 %v943_v60, 0.0  ;;  %v1107_v60 = vld [vmem:[%s3464_s5 + $0x60] sm:$0xff] }
  0xfc   : > { %v950_v33 = vmax.f32 %v942_v24, 0.0  ;;  %1058 = vmatpush.msrb.mxu0 %v1015_v45  ;;  %1184 = vmatpush.msra.mxu1 %v2082_v54  ;;  %v2068_v24 = vld [vmem:[%s3464_s5 + $0xc8] sm:$0xff]  ;;  %v2137_v44 = vld [vmem:[%s3464_s5 + $0x260] sm:$0xff]  ;;  %v2173_v45 = vld [vmem:[%s3464_s5 + $0x350] sm:$0xff] }
  0xfd   : > { %2057 = vmatpush.msk.msra.mxu2 %vm962_vm1, %v951_v7  ;;  %v2076_v7 = vld [vmem:[%s3464_s5 + $0x108] sm:$0xff]  ;;  %v2133_v52 = vld [vmem:[%s3464_s5 + $0x240] sm:$0xff] }
  0xfe   : > { %2121 = vmatpush.msk.msra.mxu0 %vm962_vm1, %v2119_v55  ;;  %1185 = vmatpush.msra.mxu1 %v2080_v58  ;;  %v1104_v54 = vld [vmem:[%s3464_s5 + $0x48] sm:$0xff]  ;;  %v1102_v58 = vld [vmem:[%s3464_s5 + $0x38] sm:$0xff] }
  0xff   : > { %v920_v15 = vpop.f32.mrf.mxu1  ;;  %982 = vmatpush.msra.mxu2 %v949_v10  ;;  %v2108_v55 = vld [vmem:[%s3464_s5 + $0x1a8] sm:$0xff] }
 0x100   : > { %v930_v19 = vadd.f32 %v920_v15, %v839_v12  ;;  %1301 = vmatpush.msra.mxu0 %v2117_v59  ;;  %1186 = vmatpush.msra.mxu1 %v2078_v1  ;;  %v2074_v12 = vld [vmem:[%s3464_s5 + $0xf8] sm:$0xff]  ;;  %v2071_v15 = vld [vmem:[%s3464_s5 + $0xe0] sm:$0xff]  ;;  %v2104_v1 = vld [vmem:[%s3464_s5 + $0x188] sm:$0xff] }
 0x101   : > { %983 = vmatpush.msra.mxu2 %v947_v14  ;;  %v2111_v14 = vld [vmem:[%s3464_s5 + $0x1c0] sm:$0xff]  ;;  %v2106_v59 = vld [vmem:[%s3464_s5 + $0x198] sm:$0xff] }
 0x102   : > { %v944_v25 = vadd.f32 %v934_v17, %v930_v19  ;;  %1302 = vmatpush.msra.mxu0 %v2115_v0  ;;  %1187 = vmatpush.msra.mxu1 %v2076_v7  ;;  %v2109_v17 = vld [vmem:[%s3464_s5 + $0x1b0] sm:$0xff]  ;;  %v2070_v19 = vld [vmem:[%s3464_s5 + $0xd8] sm:$0xff]  ;;  %v1100_v0 = vld [vmem:[%s3464_s5 + $0x28] sm:$0xff] }
 0x103   : > { %984 = vmatpush.msra.mxu2 %v945_v21  ;;  %v1095_v21 = vld [vmem:[%s3464_s5] sm:$0xff]  ;;  %v2102_v7 = vld [vmem:[%s3464_s5 + $0x178] sm:$0xff] }
 0x104   : > { %v952_v30 = vmax.f32 %v944_v25, 0.0  ;;  %2058 = vmatmul.msk.f32.vlgmr.msra.gmra.mxu2 %vm955_vm2, %v953_v20  ;;  %1303 = vmatpush.msra.mxu0 %v2113_v2  ;;  %v2147_v25 = vld [vmem:[%s3464_s5 + $0x2b0] sm:$0xf] }
 0x105   : > { %1077 = vmatpush.msrb.mxu2 %v1035_v27  ;;  %1188 = vmatpush.msra.mxu1 %v2074_v12  ;;  %v2105_v27 = vld [vmem:[%s3464_s5 + $0x190] sm:$0xff]  ;;  %v2155_v12 = vld [vmem:[%s3464_s5 + $0x2c0] sm:$0xff] }
 0x106   : > { %2060 = vmatpush.msk.msra.mxu3 %vm962_vm1, %v952_v30  ;;  %1304 = vmatpush.msra.mxu0 %v2111_v14  ;;  %v1116_v30 = vld [vmem:[%s3464_s5 + $0xa8] sm:$0xf]  ;;  %v2127_v2 = vld [vmem:[%s3464_s5 + $0x210] sm:$0xff] }
 0x107   : > { %1078 = vmatpush.msrb.mxu2 %v1034_v26  ;;  %1189 = vmatpush.msra.mxu1 %v2072_v11  ;;  %v2103_v26 = vld [vmem:[%s3464_s5 + $0x180] sm:$0xff] }
 0x108   : > { %1005 = vmatpush.msra.mxu3 %v950_v33  ;;  %1305 = vmatpush.msra.mxu0 %v2109_v17  ;;  %v1114_v33 = vld [vmem:[%s3464_s5 + $0x98] sm:$0xff] }
 0x109   : > { %1079 = vmatpush.msrb.mxu2 %v1033_v34  ;;  %1190 = vmatpush.msra.mxu1 %v2070_v19  ;;  %v2101_v34 = vld [vmem:[%s3464_s5 + $0x170] sm:$0xff]  ;;  %v2148_v17 = vld [vmem:[%s3464_s5 + $0x2b8] sm:$0xf] }
 0x10a   : > { %1006 = vmatpush.msra.mxu3 %v948_v36  ;;  %1306 = vmatpush.msra.mxu0 %v2107_v22  ;;  %v2141_v36 = vld [vmem:[%s3464_s5 + $0x280] sm:$0xff] }
 0x10b   : > { %1080 = vmatpush.msrb.mxu2 %v1032_v37  ;;  %1191 = vmatpush.msra.mxu1 %v2068_v24  ;;  %v1112_v37 = vld [vmem:[%s3464_s5 + $0x88] sm:$0xff]  ;;  %v2174_v24 = vld [vmem:[%s3464_s5 + $0x358] sm:$0xff] }
 0x10c   : > { %1007 = vmatpush.msra.mxu3 %v946_v38  ;;  %2059 = vmatmul.msk.f32.gmra.mxu2 %vm955_vm2, %v954_v40  ;;  %v2099_v38 = vld [vmem:[%s3464_s5 + $0x160] sm:$0xff] }
 0x10d   : > { %2061 = vmatmul.msk.f32.vlgmr.msra.gmra.mxu3 %vm955_vm2, %v953_v20  ;;  %1081 = vmatpush.msrb.mxu2 %v1031_v42  ;;  %v2065_v20 = vld [vmem:[%s3464_s5 + $0xb0] sm:$0xff]  ;;  %v1110_v42 = vld [vmem:[%s3464_s5 + $0x78] sm:$0xff] }
 0x10e   : > { %2087 = vmatpush.msk.msrb.mxu3 %vm962_vm1, %v2085_v48  ;;  %1307 = vmatpush.msra.mxu0 %v2105_v27  ;;  %v2135_v48 = vld [vmem:[%s3464_s5 + $0x250] sm:$0xff]  ;;  %v2172_v27 = vld [vmem:[%s3464_s5 + $0x348] sm:$0xff] }
 0x10f   : > { %2093 = vmatpush.msk.msra.mxu2 %vm962_vm1, %v1115_v46  ;;  %1192 = vmatpush.msra.mxu1 %v2066_v28  ;;  %v1108_v46 = vld [vmem:[%s3464_s5 + $0x68] sm:$0xff] }
 0x110   : > { %1160 = vmatpush.msrb.mxu3 %v2083_v50  ;;  %1308 = vmatpush.msra.mxu0 %v2103_v26  ;;  %v1106_v50 = vld [vmem:[%s3464_s5 + $0x58] sm:$0xff]  ;;  %v2142_v28 = vld [vmem:[%s3464_s5 + $0x288] sm:$0xff] }
 0x111   : > { %1218 = vmatpush.msra.mxu2 %v1113_v47  ;;  %2124 = vmatpush.msk.msrb.mxu1 %vm962_vm1, %v2120_v31  ;;  %v2112_v47 = vld [vmem:[%s3464_s5 + $0x1c8] sm:$0xff]  ;;  %v2140_v31 = vld [vmem:[%s3464_s5 + $0x278] sm:$0xff] }
 0x112   : > { %1161 = vmatpush.msrb.mxu3 %v2081_v53  ;;  %1309 = vmatpush.msra.mxu0 %v2101_v34  ;;  %v2169_v53 = vld [vmem:[%s3464_s5 + $0x330] sm:$0xff]  ;;  %v2166_v34 = vld [vmem:[%s3464_s5 + $0x318] sm:$0xff] }
 0x113   : > { %1219 = vmatpush.msra.mxu2 %v1111_v51  ;;  %1324 = vmatpush.msrb.mxu1 %v2118_v35  ;;  %v2110_v51 = vld [vmem:[%s3464_s5 + $0x1b8] sm:$0xff] }
 0x114   : > { %1162 = vmatpush.msrb.mxu3 %v2079_v57  ;;  %1310 = vmatpush.msra.mxu0 %v2099_v38  ;;  %v2167_v57 = vld [vmem:[%s3464_s5 + $0x320] sm:$0xff]  ;;  %v2136_v35 = vld [vmem:[%s3464_s5 + $0x258] sm:$0xff] }
 0x115   : > { %2062 = vmatmul.msk.f32.gmra.mxu3 %vm955_vm2, %v954_v40  ;;  %1220 = vmatpush.msra.mxu2 %v1109_v56  ;;  %v2139_v40 = vld [vmem:[%s3464_s5 + $0x270] sm:$0xff] }
 0x116   : > { %1163 = vmatpush.msrb.mxu3 %v2077_v62  ;;  %1325 = vmatpush.msrb.mxu1 %v2116_v39  ;;  %v2131_v56 = vld [vmem:[%s3464_s5 + $0x230] sm:$0xff]  ;;  %v2134_v39 = vld [vmem:[%s3464_s5 + $0x248] sm:$0xff] }
 0x117   : > { %1221 = vmatpush.msra.mxu2 %v1107_v60  ;;  %v2129_v60 = vld [vmem:[%s3464_s5 + $0x220] sm:$0xff]  ;;  %v2165_v62 = vld [vmem:[%s3464_s5 + $0x310] sm:$0xff] }
 0x118   : > { %1164 = vmatpush.msrb.mxu3 %v2075_v6  ;;  %1326 = vmatpush.msrb.mxu1 %v2114_v43  ;;  %v1098_v6 = vld [vmem:[%s3464_s5 + $0x18] sm:$0xff]  ;;  %v2130_v43 = vld [vmem:[%s3464_s5 + $0x228] sm:$0xff] }
 0x119   : > { %1222 = vmatpush.msra.mxu2 %v1105_v3  ;;  %v2163_v3 = vld [vmem:[%s3464_s5 + $0x300] sm:$0xff] }
 0x11a   : > { %1165 = vmatpush.msrb.mxu3 %v2073_v4  ;;  %1327 = vmatpush.msrb.mxu1 %v2112_v47  ;;  %v2156_v47 = vld [vmem:[%s3464_s5 + $0x2c8] sm:$0xff] }
 0x11b   : > { %1223 = vmatpush.msra.mxu2 %v1103_v63 }
 0x11c   : > { %1166 = vmatpush.msrb.mxu3 %v2071_v15  ;;  %1328 = vmatpush.msrb.mxu1 %v2110_v51 }
 0x11d   : > { %1224 = vmatpush.msra.mxu2 %v1101_v5  ;;  %v2161_v5 = vld [vmem:[%s3464_s5 + $0x2f0] sm:$0xff] }
 0x11e   : > { %1167 = vmatpush.msrb.mxu3 %v2069_v18  ;;  %1329 = vmatpush.msrb.mxu1 %v2108_v55  ;;  %v2176_v18 = vld [vmem:[%s3464_s5 + $0x368] sm:$0xf] }
 0x11f   : > { %1225 = vmatpush.msra.mxu2 %v1099_v13 }
 0x120   : > { %1168 = vmatpush.msrb.mxu3 %v2067_v23  ;;  %1330 = vmatpush.msrb.mxu1 %v2106_v59  ;;  %v2146_v23 = vld [vmem:[%s3464_s5 + $0x2a8] sm:$0xff] }
 0x121   : > { %1226 = vmatpush.msra.mxu2 %v1097_v16 }
 0x122   : > { %1169 = vmatpush.msrb.mxu3 %v2065_v20  ;;  %1331 = vmatpush.msrb.mxu1 %v2104_v1  ;;  %v3116_v1 = vld [vmem:[%s3465_s6] sm:$0x3] }
 0x123   : > { %1227 = vmatpush.msra.mxu2 %v1095_v21 }
 0x124   : > { %2096 = vmatpush.msk.msra.mxu3 %vm962_vm1, %v1116_v30  ;;  %1332 = vmatpush.msrb.mxu1 %v2102_v7 }
 0x126   : > { %1241 = vmatpush.msra.mxu3 %v1114_v33  ;;  %v2138_v33 = vld [vmem:[%s3464_s5 + $0x268] sm:$0xff] }
 0x128   : > { %1242 = vmatpush.msra.mxu3 %v1112_v37 }
 0x12a   : > { %1243 = vmatpush.msra.mxu3 %v1110_v42  ;;  %v2160_v42 = vld [vmem:[%s3464_s5 + $0x2e8] sm:$0xff] }
 0x12c   : > { %1244 = vmatpush.msra.mxu3 %v1108_v46  ;;  %v2128_v46 = vld [vmem:[%s3464_s5 + $0x218] sm:$0xff] }
 0x12e   : > { %1245 = vmatpush.msra.mxu3 %v1106_v50 }
 0x130   : > { %1246 = vmatpush.msra.mxu3 %v1104_v54 }
 0x132   : > { %1247 = vmatpush.msra.mxu3 %v1102_v58 }
 0x134   : > { %1248 = vmatpush.msra.mxu3 %v1100_v0 }
 0x136   : > { %1249 = vmatpush.msra.mxu3 %v1098_v6 }
 0x187   : > { %v986_v8 = vpop.f32.mrf.mxu2 }
 0x188   : > { %1059 = vmatmul.f32.vlgmr.msrb.gmra.mxu0 %v986_v8  ;;  %v1096_v8 = vld [vmem:[%s3464_s5 + $0x8] sm:$0xff] }
 0x189   : > { %2177 = vmatpush.msk.msrb.mxu0 %vm962_vm1, %v2175_v41  ;;  %1250 = vmatpush.msra.mxu3 %v1096_v8  ;;  %v2132_v41 = vld [vmem:[%s3464_s5 + $0x238] sm:$0xff] }
 0x18b   : > { %1475 = vmatpush.msrb.mxu0 %v2173_v45 }
 0x18d   : > { %1476 = vmatpush.msrb.mxu0 %v2171_v49 }
 0x18f   : > { %v989_v9 = vpop.f32.mrf.mxu2  ;;  %1477 = vmatpush.msrb.mxu0 %v2169_v53 }
 0x190   : > { %v1009_v10 = vpop.f32.mrf.mxu3  ;;  %1062 = vmatmul.f32.gmra.mxu0 %v989_v9  ;;  %v2100_v9 = vld [vmem:[%s3464_s5 + $0x168] sm:$0xff] }
 0x191   : > { %2063 = vmatmul.msk.f32.vlgmr.msrb.gmra.mxu2 %vm1036_vm3, %v1009_v10  ;;  %1478 = vmatpush.msrb.mxu0 %v2167_v57  ;;  %v2159_v10 = vld [vmem:[%s3464_s5 + $0x2e0] sm:$0xff] }
 0x192   : > { %2149 = vmatpush.msk.msrb.mxu2 %vm962_vm1, %v2147_v25  ;;  %1333 = vmatpush.msrb.mxu1 %v2100_v9  ;;  %v2144_v25 = vld [vmem:[%s3464_s5 + $0x298] sm:$0xff] }
 0x193   : > { %1479 = vmatpush.msrb.mxu0 %v2165_v62 }
 0x194   : > { %1388 = vmatpush.msrb.mxu2 %v2145_v29  ;;  %v2170_v29 = vld [vmem:[%s3464_s5 + $0x338] sm:$0xff] }
 0x195   : > { %1480 = vmatpush.msrb.mxu0 %v2163_v3 }
 0x196   : > { %1389 = vmatpush.msrb.mxu2 %v2143_v32  ;;  %v2168_v32 = vld [vmem:[%s3464_s5 + $0x328] sm:$0xff] }
 0x197   : > { %1481 = vmatpush.msrb.mxu0 %v2161_v5 }
 0x198   : > { %v1012_v61 = vpop.f32.mrf.mxu3  ;;  %1390 = vmatpush.msrb.mxu2 %v2141_v36  ;;  %v2164_v36 = vld [vmem:[%s3464_s5 + $0x308] sm:$0xff] }
 0x199   : > { %2064 = vmatmul.msk.f32.gmra.mxu2 %vm1036_vm3, %v1012_v61  ;;  %v2157_v61 = vld [vmem:[%s3464_s5 + $0x2d0] sm:$0xff]  ;;  %1482 = vmatpush.msrb.mxu0 %v2159_v10  ;;  %v1600_v10 = vld [vmem:[%s3467_s8 + $0x78] sm:$0xff] }
 0x19a   : > { %1391 = vmatpush.msrb.mxu2 %v2139_v40  ;;  %v2162_v40 = vld [vmem:[%s3464_s5 + $0x2f8] sm:$0xff] }
 0x19b   : > { %1483 = vmatpush.msrb.mxu0 %v2157_v61  ;;  %v1599_v61 = vld [vmem:[%s3467_s8 + $0x70] sm:$0xff] }
 0x19c   : > { %1392 = vmatpush.msrb.mxu2 %v2137_v44  ;;  %v2158_v44 = vld [vmem:[%s3464_s5 + $0x2d8] sm:$0xff] }
 0x19d   : > { %1484 = vmatpush.msrb.mxu0 %v2155_v12 }
 0x19e   : > { %1393 = vmatpush.msrb.mxu2 %v2135_v48 }
 0x1a0   : > { %1394 = vmatpush.msrb.mxu2 %v2133_v52 }
 0x1a2   : > { %1395 = vmatpush.msrb.mxu2 %v2131_v56 }
 0x1a4   : > { %1396 = vmatpush.msrb.mxu2 %v2129_v60 }
 0x1a6   : > { %1397 = vmatpush.msrb.mxu2 %v2127_v2 }
 0x205   : > { %v1060_v63 = vpop.f32.mrf.mxu0 }
 0x20d   : > { %v1063_v14 = vpop.f32.mrf.mxu0 }
 0x214   : > { %v1083_v4 = vpop.f32.mrf.mxu2 }
 0x215   : > { %v1084_v13 = vadd.f32 %v1083_v4, %v1060_v63  ;;  %v1521_v63 = vperm.slane %v3116_v1, 0 }
 0x217   : > { %1090 = vst.msk [vmem:[#allocation2] sm:$0xff] %vm1089_vm4, %v1084_v13 }
 0x21c   : > { %v1086_v15 = vpop.f32.mrf.mxu2 }
 0x21d   : > { %v1087_v11 = vadd.f32 %v1086_v15, %v1063_v14  ;;  %v1598_v14 = vld [vmem:[%s3467_s8 + $0x68] sm:$0xff] }
 0x21e   : > { %v1093_v16 = vld [vmem:[#allocation2] sm:$0xff] }
 0x21f   : > { %1092 = vst.msk [vmem:[#allocation2 + $0x8] sm:$0x3f] %vm1091_vm5, %v1087_v11  ;;  %2094 = vmatmul.msk.f32.vlgmr.msra.gmra.mxu2 %vm1089_vm4, %v1093_v16 }
 0x226   : > { %v1117_v19 = vld [vmem:[#allocation2 + $0x1] sm:$0xff]  ;;  %v1118_v20 = vld [vmem:[#allocation2 + $0x9] sm:$0x3]  ;;  %v1346_v37 = vld [vmem:[#allocation2 + $0xb] sm:$0x3] }
 0x227   : > { %v1094_v21 = vld [vmem:[#allocation2 + $0x8] sm:$0x3]  ;;  %2088 = vmatmul.msk.f32.vlgmr.msrb.gmra.mxu3 %vm1089_vm4, %v1117_v19  ;;  %2091 = vmatmul.msk.f32.vlgmr.msra.gmra.mxu1 %vm1089_vm4, %v1117_v19  ;;  %v1259_v30 = vld [vmem:[#allocation2 + $0xa] sm:$0x3]  ;;  %v1433_v45 = vld [vmem:[#allocation2 + $0xc] sm:$0x3] }
 0x228   : > { %v1258_v22 = vld [vmem:[#allocation2 + $0x2] sm:$0xff]  ;;  %2095 = vmatmul.msk.f32.gmra.mxu2 %vm1089_vm4, %v1094_v21  ;;  %2152 = vmatpush.msk.msrb.mxu3 %vm962_vm1, %v2148_v17  ;;  %v1604_v19 = vld [vmem:[%s3467_s8 + $0x98] sm:$0xff] }
 0x229   : > { %2122 = vmatmul.msk.f32.vlgmr.msra.gmra.mxu0 %vm1089_vm4, %v1258_v22  ;;  %2180 = vmatpush.msk.msra.mxu1 %vm962_vm1, %v2176_v18  ;;  %v1345_v26 = vld [vmem:[#allocation2 + $0x3] sm:$0xff]  ;;  %v1596_v18 = vld [vmem:[%s3467_s8 + $0x58] sm:$0xff] }
 0x22a   : > { %1411 = vmatpush.msrb.mxu3 %v2146_v23  ;;  %v1432_v38 = vld [vmem:[#allocation2 + $0x4] sm:$0xff]  ;;  %1608 = vmatpush.msra.mxu0 %v1600_v10  ;;  %v1603_v23 = vld [vmem:[%s3467_s8 + $0x90] sm:$0xff] }
 0x22b   : > { %1498 = vmatpush.msra.mxu1 %v2174_v24  ;;  %v1594_v24 = vld [vmem:[%s3467_s8 + $0x48] sm:$0xff]  ;;  %v1651_v10 = vld [vmem:[%s3468_s9] sm:$0xff] }
 0x22c   : > { %1412 = vmatpush.msrb.mxu3 %v2144_v25  ;;  %1609 = vmatpush.msra.mxu0 %v1599_v61 }
 0x22d   : > { %1499 = vmatpush.msra.mxu1 %v2172_v27  ;;  %v1602_v27 = vld [vmem:[%s3467_s8 + $0x88] sm:$0xff] }
 0x22e   : > { %1413 = vmatpush.msrb.mxu3 %v2142_v28  ;;  %1610 = vmatpush.msra.mxu0 %v1598_v14  ;;  %v2188_v14 = vld [vmem:[%s3468_s9 + $0x50] sm:$0xff] }
 0x22f   : > { %2089 = vmatmul.msk.f32.gmra.mxu3 %vm1089_vm4, %v1118_v20  ;;  %2092 = vmatmul.msk.f32.gmra.mxu1 %vm1089_vm4, %v1118_v20 }
 0x230   : > { %2150 = vmatmul.msk.f32.vlgmr.msrb.gmra.mxu2 %vm1089_vm4, %v1345_v26  ;;  %1500 = vmatpush.msra.mxu1 %v2170_v29  ;;  %v1593_v29 = vld [vmem:[%s3467_s8 + $0x40] sm:$0xff] }
 0x231   : > { %2123 = vmatmul.msk.f32.gmra.mxu0 %vm1089_vm4, %v1259_v30  ;;  %1414 = vmatpush.msrb.mxu3 %v2140_v31 }
 0x232   : > { %1501 = vmatpush.msra.mxu1 %v2168_v32  ;;  %v1591_v32 = vld [vmem:[%s3467_s8 + $0x30] sm:$0xff] }
 0x233   : > { %1415 = vmatpush.msrb.mxu3 %v2138_v33 }
 0x234   : > { %1502 = vmatpush.msra.mxu1 %v2166_v34  ;;  %v1590_v34 = vld [vmem:[%s3467_s8 + $0x28] sm:$0xff] }
 0x235   : > { %1416 = vmatpush.msrb.mxu3 %v2136_v35 }
 0x236   : > { %1503 = vmatpush.msra.mxu1 %v2164_v36 }
 0x237   : > { %2097 = vmatmul.msk.f32.vlgmr.msra.gmra.mxu3 %vm1089_vm4, %v1093_v16  ;;  %2125 = vmatmul.msk.f32.vlgmr.msrb.gmra.mxu1 %vm1089_vm4, %v1258_v22  ;;  %v1597_v16 = vld [vmem:[%s3467_s8 + $0x60] sm:$0xff]  ;;  %v1595_v22 = vld [vmem:[%s3467_s8 + $0x50] sm:$0xff] }
 0x238   : > { %2151 = vmatmul.msk.f32.gmra.mxu2 %vm1089_vm4, %v1346_v37  ;;  %1417 = vmatpush.msrb.mxu3 %v2134_v39 }
 0x239   : > { %2178 = vmatmul.msk.f32.vlgmr.msrb.gmra.mxu0 %vm1089_vm4, %v1432_v38  ;;  %1504 = vmatpush.msra.mxu1 %v2162_v40  ;;  %v1522_v40 = vperm.slane %v3116_v1, 1 }
 0x23a   : > { %1418 = vmatpush.msrb.mxu3 %v2132_v41  ;;  %1611 = vmatpush.msra.mxu0 %v1597_v16  ;;  %v2220_v16 = vld [vmem:[%s3468_s9 + $0x138] sm:$0xff] }
 0x23b   : > { %1505 = vmatpush.msra.mxu1 %v2160_v42 }
 0x23c   : > { %1419 = vmatpush.msrb.mxu3 %v2130_v43  ;;  %1612 = vmatpush.msra.mxu0 %v1596_v18  ;;  %v2229_v18 = vld [vmem:[%s3468_s9 + $0x178] sm:$0xff] }
 0x23d   : > { %1506 = vmatpush.msra.mxu1 %v2158_v44 }
 0x23e   : > { %1420 = vmatpush.msrb.mxu3 %v2128_v46  ;;  %1613 = vmatpush.msra.mxu0 %v1595_v22  ;;  %v2203_v22 = vld [vmem:[%s3468_s9 + $0xb8] sm:$0xff] }
 0x23f   : > { %2098 = vmatmul.msk.f32.gmra.mxu3 %vm1089_vm4, %v1094_v21  ;;  %2126 = vmatmul.msk.f32.gmra.mxu1 %vm1089_vm4, %v1259_v30  ;;  %v1533_v21 = vld [vmem:[%s3466_s7] sm:$0x1f]  ;;  %v1592_v30 = vld [vmem:[%s3467_s8 + $0x38] sm:$0xff] }
 0x240   : > { %1507 = vmatpush.msra.mxu1 %v2156_v47  ;;  %1614 = vmatpush.msra.mxu0 %v1594_v24  ;;  %v1588_v47 = vld [vmem:[%s3467_s8 + $0x18] sm:$0xff]  ;;  %v2218_v24 = vld [vmem:[%s3468_s9 + $0x128] sm:$0xff] }
 0x241   : > { %2179 = vmatmul.msk.f32.gmra.mxu0 %vm1089_vm4, %v1433_v45 }
 0x242   : > { %1615 = vmatpush.msra.mxu0 %v1593_v29  ;;  %v2201_v29 = vld [vmem:[%s3468_s9 + $0xa8] sm:$0xff] }
 0x244   : > { %1616 = vmatpush.msra.mxu0 %v1592_v30  ;;  %v2216_v30 = vld [vmem:[%s3468_s9 + $0x118] sm:$0xff] }
 0x246   : > { %1617 = vmatpush.msra.mxu0 %v1591_v32  ;;  %v2215_v32 = vld [vmem:[%s3468_s9 + $0x110] sm:$0xff] }
 0x247   : > { %2153 = vmatmul.msk.f32.vlgmr.msrb.gmra.mxu3 %vm1089_vm4, %v1345_v26  ;;  %2181 = vmatmul.msk.f32.vlgmr.msra.gmra.mxu1 %vm1089_vm4, %v1432_v38 }
 0x248   : > { %1618 = vmatpush.msra.mxu0 %v1590_v34  ;;  %v2224_v34 = vld [vmem:[%s3468_s9 + $0x150] sm:$0xff] }
 0x24f   : > { %2154 = vmatmul.msk.f32.gmra.mxu3 %vm1089_vm4, %v1346_v37  ;;  %2182 = vmatmul.msk.f32.gmra.mxu1 %vm1089_vm4, %v1433_v45  ;;  %v1589_v37 = vld [vmem:[%s3467_s8 + $0x20] sm:$0xff] }
 0x250   : > { %1619 = vmatpush.msra.mxu0 %v1589_v37  ;;  %v2222_v37 = vld [vmem:[%s3468_s9 + $0x140] sm:$0xff] }
 0x252   : > { %1620 = vmatpush.msra.mxu0 %v1588_v47 }
 0x2a2   : > { %v1229_v48 = vpop.f32.mrf.mxu2 }
 0x2a4   : > { %v1194_v49 = vpop.f32.mrf.mxu1 }
 0x2a6   : > { %v1312_v50 = vpop.f32.mrf.mxu0 }
 0x2aa   : > { %v1171_v51 = vpop.f32.mrf.mxu3 }
 0x2ab   : > { %v1232_v52 = vpop.f32.mrf.mxu2  ;;  %v1230_v55 = vadd.f32 %v1229_v48, %v1171_v51  ;;  %v1601_v48 = vld [vmem:[%s3467_s8 + $0x80] sm:$0xff]  ;;  %v1660_v51 = vld [vmem:[%s3468_s9 + $0x48] sm:$0xff] }
 0x2ac   : > { %v1197_v53 = vpop.f32.mrf.mxu1 }
 0x2ad   : > { %v1341_v60 = vadd.f32 %v1312_v50, %v1230_v55  ;;  %v1586_v50 = vld [vmem:[%s3467_s8 + $0x8] sm:$0xff]  ;;  %v1585_v55 = vld [vmem:[%s3467_s8] sm:$0xff] }
 0x2ae   : > { %v1315_v54 = vpop.f32.mrf.mxu0 }
 0x2b2   : > { %v1174_v56 = vpop.f32.mrf.mxu3 }
 0x2b3   : > { %v1399_v57 = vpop.f32.mrf.mxu2  ;;  %v1233_v59 = vadd.f32 %v1232_v52, %v1174_v56  ;;  %v1659_v52 = vld [vmem:[%s3468_s9 + $0x40] sm:$0xff]  ;;  %v1658_v56 = vld [vmem:[%s3468_s9 + $0x38] sm:$0xff] }
 0x2b4   : > { %v1335_v62 = vpop.f32.mrf.mxu1  ;;  %v1428_v0 = vadd.f32 %v1399_v57, %v1341_v60  ;;  %v2195_v57 = vld [vmem:[%s3468_s9 + $0x88] sm:$0xff]  ;;  %v2194_v60 = vld [vmem:[%s3468_s9 + $0x80] sm:$0xff] }
 0x2b5   : > { %v1343_v3 = vadd.f32 %v1315_v54, %v1233_v59  ;;  %v2196_v54 = vld [vmem:[%s3468_s9 + $0x90] sm:$0xff]  ;;  %v2209_v59 = vld [vmem:[%s3468_s9 + $0xe8] sm:$0xff] }
 0x2b6   : > { %v1486_v58 = vpop.f32.mrf.mxu0 }
 0x2b7   : > { %v1515_v7 = vadd.f32 %v1486_v58, %v1428_v0  ;;  %v1657_v58 = vld [vmem:[%s3468_s9 + $0x30] sm:$0xff]  ;;  %v2208_v0 = vld [vmem:[%s3468_s9 + $0xe0] sm:$0xff] }
 0x2b9   : > { %v1525_v4 = vadd.f32 %v1521_v63, %v1515_v7  ;;  %v1654_v7 = vld [vmem:[%s3468_s9 + $0x18] sm:$0xff] }
 0x2ba   : > { %v1252_v2 = vpop.f32.mrf.mxu3 }
 0x2bb   : > { %v1402_v6 = vpop.f32.mrf.mxu2  ;;  %v1529_v17 = vmax.f32 %v1525_v4, 0.0  ;;  %v1253_v25 = vadd.f32 %v1252_v2, %v1194_v49  ;;  %v1587_v49 = vld [vmem:[%s3467_s8 + $0x10] sm:$0xff]  ;;  %v2193_v2 = vld [vmem:[%s3468_s9 + $0x78] sm:$0xff] }
 0x2bc   : > { %v1430_v5 = vadd.f32 %v1402_v6, %v1343_v3  ;;  %v1338_v12 = vpop.f32.mrf.mxu1  ;;  %1621 = vmatpush.msra.mxu0 %v1587_v49  ;;  %v1655_v3 = vld [vmem:[%s3468_s9 + $0x20] sm:$0xff]  ;;  %v2192_v6 = vld [vmem:[%s3468_s9 + $0x70] sm:$0xff]  ;;  %v2207_v4 = vld [vmem:[%s3468_s9 + $0xd8] sm:$0xff] }
 0x2bd   : > { %v1342_v31 = vadd.f32 %v1335_v62, %v1253_v25  ;;  %v1656_v62 = vld [vmem:[%s3468_s9 + $0x28] sm:$0xff]  ;;  %v2202_v25 = vld [vmem:[%s3468_s9 + $0xb0] sm:$0xff] }
 0x2be   : > { %v1489_v8 = vpop.f32.mrf.mxu0  ;;  %1622 = vmatpush.msra.mxu0 %v1586_v50 }
 0x2bf   : > { %v1517_v9 = vadd.f32 %v1489_v8, %v1430_v5  ;;  %v1653_v5 = vld [vmem:[%s3468_s9 + $0x10] sm:$0xff]  ;;  %v2190_v8 = vld [vmem:[%s3468_s9 + $0x60] sm:$0xff] }
 0x2c0   : > { %1623 = vmatpush.msra.mxu0 %v1585_v55  ;;  %v1838_v55 = vld [vmem:[%s3470_s11 + $0x38] sm:$0xff] }
 0x2c1   : > { %v1527_v13 = vadd.f32 %v1521_v63, %v1517_v9  ;;  %v2191_v63 = vld [vmem:[%s3468_s9 + $0x68] sm:$0xff] }
 0x2c2   : > { %v1255_v11 = vpop.f32.mrf.mxu3  ;;  %v1652_v9 = vld [vmem:[%s3468_s9 + $0x8] sm:$0xff] }
 0x2c3   : > { %v1531_v15 = vmax.f32 %v1527_v13, 0.0  ;;  %v1256_v26 = vadd.f32 %v1255_v11, %v1197_v53  ;;  %v2197_v53 = vld [vmem:[%s3468_s9 + $0x98] sm:$0xff]  ;;  %v2206_v13 = vld [vmem:[%s3468_s9 + $0xd0] sm:$0xff]  ;;  %v2205_v11 = vld [vmem:[%s3468_s9 + $0xc8] sm:$0xff] }
 0x2c4   : > { %v1509_v20 = vpop.f32.mrf.mxu1  ;;  %1683 = vmatpush.msrb.mxu1 %v2197_v53 }
 0x2c5   : > { %2183 = vmatpush.msk.msra.mxu2 %vm1538_vm6, %v1531_v15  ;;  %v1344_v35 = vadd.f32 %v1338_v12, %v1256_v26  ;;  %v2189_v12 = vld [vmem:[%s3468_s9 + $0x58] sm:$0xff]  ;;  %v2231_v15 = vld [vmem:[%s3468_s9 + $0x188] sm:$0xff] }
 0x2c6   : > { %1684 = vmatpush.msrb.mxu1 %v2196_v54  ;;  %v2225_v26 = vld [vmem:[%s3468_s9 + $0x158] sm:$0xff]  ;;  %v1839_v54 = vld [vmem:[%s3470_s11 + $0x40] sm:$0xff] }
 0x2c7   : > { %1560 = vmatpush.msra.mxu2 %v1529_v17  ;;  %v2230_v17 = vld [vmem:[%s3468_s9 + $0x180] sm:$0xff] }
 0x2c8   : > { %2184 = vmatmul.msk.f32.vlgmr.msra.gmra.mxu2 %vm1534_vm7, %v1533_v21  ;;  %1685 = vmatpush.msrb.mxu1 %v2195_v57  ;;  %v1836_v57 = vld [vmem:[%s3470_s11 + $0x28] sm:$0xff] }
 0x2c9   : > { %1640 = vmatpush.msrb.mxu2 %v1604_v19  ;;  %v2204_v19 = vld [vmem:[%s3468_s9 + $0xc0] sm:$0xff] }
 0x2ca   : > { %v1422_v28 = vpop.f32.mrf.mxu3  ;;  %1686 = vmatpush.msrb.mxu1 %v2194_v60  ;;  %v1833_v60 = vld [vmem:[%s3470_s11 + $0x10] sm:$0xff] }
 0x2cb   : > { %1641 = vmatpush.msrb.mxu2 %v1603_v23  ;;  %v1429_v33 = vadd.f32 %v1422_v28, %v1342_v31  ;;  %v2228_v23 = vld [vmem:[%s3468_s9 + $0x170] sm:$0xff]  ;;  %v2226_v28 = vld [vmem:[%s3468_s9 + $0x160] sm:$0xff] }
 0x2cc   : > { %v1512_v41 = vpop.f32.mrf.mxu1  ;;  %1687 = vmatpush.msrb.mxu1 %v2193_v2  ;;  %v2200_v31 = vld [vmem:[%s3468_s9 + $0xa0] sm:$0xff]  ;;  %v1881_v2 = vld [vmem:[%s3472_s13 + $0x48] sm:$0xff] }
 0x2cd   : > { %1642 = vmatpush.msrb.mxu2 %v1602_v27  ;;  %v1516_v38 = vadd.f32 %v1509_v20, %v1429_v33  ;;  %v2217_v27 = vld [vmem:[%s3468_s9 + $0x120] sm:$0xff]  ;;  %v2227_v20 = vld [vmem:[%s3468_s9 + $0x168] sm:$0xff] }
 0x2ce   : > { %1688 = vmatpush.msrb.mxu1 %v2192_v6  ;;  %v2214_v33 = vld [vmem:[%s3468_s9 + $0x108] sm:$0xff]  ;;  %v1879_v6 = vld [vmem:[%s3472_s13 + $0x38] sm:$0xff] }
 0x2cf   : > { %v1526_v44 = vadd.f32 %v1522_v40, %v1516_v38  ;;  %1643 = vmatpush.msrb.mxu2 %v1601_v48  ;;  %v2212_v38 = vld [vmem:[%s3468_s9 + $0xf8] sm:$0xff] }
 0x2d0   : > { %1689 = vmatpush.msrb.mxu1 %v2191_v63  ;;  %v1877_v63 = vld [vmem:[%s3472_s13 + $0x28] sm:$0xff] }
 0x2d1   : > { %v1530_v46 = vmax.f32 %v1526_v44, 0.0  ;;  %1741 = vmatpush.msra.mxu2 %v2209_v59  ;;  %v1841_v44 = vld [vmem:[%s3470_s11 + $0x50] sm:$0xff]  ;;  %v1834_v59 = vld [vmem:[%s3470_s11 + $0x18] sm:$0xff] }
 0x2d2   : > { %v1425_v36 = vpop.f32.mrf.mxu3  ;;  %1690 = vmatpush.msrb.mxu1 %v2190_v8  ;;  %v1875_v8 = vld [vmem:[%s3472_s13 + $0x18] sm:$0xff] }
 0x2d3   : > { %v1431_v39 = vadd.f32 %v1425_v36, %v1344_v35  ;;  %1742 = vmatpush.msra.mxu2 %v2208_v0  ;;  %v2213_v35 = vld [vmem:[%s3468_s9 + $0x100] sm:$0xff]  ;;  %v2223_v36 = vld [vmem:[%s3468_s9 + $0x148] sm:$0xff] }
 0x2d4   : > { %1691 = vmatpush.msrb.mxu1 %v2189_v12  ;;  %v1831_v0 = vld [vmem:[%s3470_s11] sm:$0xff] }
 0x2d5   : > { %v1518_v42 = vadd.f32 %v1512_v41, %v1431_v39  ;;  %1743 = vmatpush.msra.mxu2 %v2207_v4  ;;  %v2211_v39 = vld [vmem:[%s3468_s9 + $0xf0] sm:$0xff]  ;;  %v1844_v41 = vld [vmem:[%s3470_s11 + $0x68] sm:$0xff] }
 0x2d6   : > { %1692 = vmatpush.msrb.mxu1 %v2188_v14 }
 0x2d7   : > { %v1528_v43 = vadd.f32 %v1522_v40, %v1518_v42  ;;  %1744 = vmatpush.msra.mxu2 %v2206_v13  ;;  %v1845_v40 = vld [vmem:[%s3470_s11 + $0x70] sm:$0xff]  ;;  %v1843_v42 = vld [vmem:[%s3470_s11 + $0x60] sm:$0xff] }
 0x2d8   : > { %1777 = vmatpush.msra.mxu1 %v2220_v16 }
 0x2d9   : > { %v1532_v45 = vmax.f32 %v1528_v43, 0.0  ;;  %1745 = vmatpush.msra.mxu2 %v2205_v11  ;;  %v1842_v43 = vld [vmem:[%s3470_s11 + $0x58] sm:$0xff]  ;;  %v1828_v11 = vld [vmem:[%s3469_s10] sm:$0x1] }
 0x2db   : > { %2185 = vmatpush.msk.msra.mxu3 %vm1538_vm6, %v1532_v45  ;;  %1746 = vmatpush.msra.mxu2 %v2204_v19  ;;  %v1840_v45 = vld [vmem:[%s3470_s11 + $0x48] sm:$0xff]  ;;  %v1874_v19 = vld [vmem:[%s3472_s13 + $0x10] sm:$0xff] }
 0x2dd   : > { %1580 = vmatpush.msra.mxu3 %v1530_v46  ;;  %1747 = vmatpush.msra.mxu2 %v2203_v22  ;;  %v1872_v22 = vld [vmem:[%s3472_s13] sm:$0xff] }
 0x2de   : > { %2186 = vmatmul.msk.f32.vlgmr.msra.gmra.mxu3 %vm1534_vm7, %v1533_v21  ;;  %v2219_v21 = vld [vmem:[%s3468_s9 + $0x130] sm:$0xff] }
 0x2df   : > { %1706 = vmatpush.msrb.mxu3 %v1660_v51  ;;  %1778 = vmatpush.msra.mxu1 %v2219_v21  ;;  %v1873_v21 = vld [vmem:[%s3472_s13 + $0x8] sm:$0xff] }
 0x2e0   : > { %1748 = vmatpush.msra.mxu2 %v2202_v25 }
 0x2e1   : > { %1707 = vmatpush.msrb.mxu3 %v1659_v52  ;;  %1779 = vmatpush.msra.mxu1 %v2218_v24 }
 0x2e2   : > { %1749 = vmatpush.msra.mxu2 %v2201_v29 }
 0x2e3   : > { %1708 = vmatpush.msrb.mxu3 %v1658_v56  ;;  %1780 = vmatpush.msra.mxu1 %v2217_v27  ;;  %v1837_v56 = vld [vmem:[%s3470_s11 + $0x30] sm:$0xff] }
 0x2e4   : > { %1750 = vmatpush.msra.mxu2 %v2200_v31 }
 0x2e5   : > { %1709 = vmatpush.msrb.mxu3 %v1657_v58  ;;  %1781 = vmatpush.msra.mxu1 %v2216_v30  ;;  %v1835_v58 = vld [vmem:[%s3470_s11 + $0x20] sm:$0xff] }
 0x2e7   : > { %1710 = vmatpush.msrb.mxu3 %v1656_v62  ;;  %1782 = vmatpush.msra.mxu1 %v2215_v32  ;;  %v1832_v62 = vld [vmem:[%s3470_s11 + $0x8] sm:$0xff] }
 0x2e9   : > { %1711 = vmatpush.msrb.mxu3 %v1655_v3  ;;  %1783 = vmatpush.msra.mxu1 %v2214_v33  ;;  %v1880_v3 = vld [vmem:[%s3472_s13 + $0x40] sm:$0xff] }
 0x2eb   : > { %1712 = vmatpush.msrb.mxu3 %v1654_v7  ;;  %1784 = vmatpush.msra.mxu1 %v2213_v35  ;;  %v1878_v7 = vld [vmem:[%s3472_s13 + $0x30] sm:$0xff] }
 0x2ed   : > { %1713 = vmatpush.msrb.mxu3 %v1653_v5  ;;  %1785 = vmatpush.msra.mxu1 %v2212_v38  ;;  %v1876_v5 = vld [vmem:[%s3472_s13 + $0x20] sm:$0xff] }
 0x2ef   : > { %1714 = vmatpush.msrb.mxu3 %v1652_v9  ;;  %1786 = vmatpush.msra.mxu1 %v2211_v39 }
 0x2f1   : > { %1715 = vmatpush.msrb.mxu3 %v1651_v10 }
 0x2f3   : > { %1813 = vmatpush.msra.mxu3 %v2231_v15 }
 0x2f5   : > { %1814 = vmatpush.msra.mxu3 %v2230_v17 }
 0x2f7   : > { %1815 = vmatpush.msra.mxu3 %v2229_v18 }
 0x2f9   : > { %1816 = vmatpush.msra.mxu3 %v2228_v23  ;;  %v1846_v23 = vld [vmem:[%s3471_s12] sm:$0x1] }
 0x2fb   : > { %1817 = vmatpush.msra.mxu3 %v2227_v20  ;;  %v1883_v20 = vld [vmem:[%s3473_s14] sm:$0x1] }
 0x2fd   : > { %1818 = vmatpush.msra.mxu3 %v2226_v28 }
 0x2ff   : > { %1819 = vmatpush.msra.mxu3 %v2225_v26 }
 0x301   : > { %1820 = vmatpush.msra.mxu3 %v2224_v34 }
 0x303   : > { %1821 = vmatpush.msra.mxu3 %v2223_v36 }
 0x305   : > { %1822 = vmatpush.msra.mxu3 %v2222_v37 }
 0x34b   : > { %v1562_v1 = vpop.f32.mrf.mxu2 }
 0x34c   : > { %1624 = vmatmul.f32.vlgmr.msra.gmra.mxu0 %v1562_v1  ;;  %v1882_v1 = vld [vmem:[%s3472_s13 + $0x50] sm:$0xf] }
 0x34d   : > { %2234 = vmatpush.msk.msrb.mxu0 %vm962_vm1, %v1882_v1 }
 0x34f   : > { %1896 = vmatpush.msrb.mxu0 %v1881_v2 }
 0x351   : > { %1897 = vmatpush.msrb.mxu0 %v1880_v3 }
 0x353   : > { %1898 = vmatpush.msrb.mxu0 %v1879_v6 }
 0x355   : > { %1899 = vmatpush.msrb.mxu0 %v1878_v7 }
 0x357   : > { %1900 = vmatpush.msrb.mxu0 %v1877_v63 }
 0x359   : > { %1901 = vmatpush.msrb.mxu0 %v1876_v5 }
 0x35b   : > { %1902 = vmatpush.msrb.mxu0 %v1875_v8 }
 0x35d   : > { %1903 = vmatpush.msrb.mxu0 %v1874_v19 }
 0x35f   : > { %1904 = vmatpush.msrb.mxu0 %v1873_v21 }
 0x361   : > { %v1582_v61 = vpop.f32.mrf.mxu3  ;;  %1905 = vmatpush.msrb.mxu0 %v1872_v22 }
 0x362   : > { %2187 = vmatmul.msk.f32.vlgmr.msrb.gmra.mxu2 %vm517_vm0, %v1582_v61 }
 0x363   : > { %1852 = vmatpush.msrb.mxu2 %v1845_v40 }
 0x365   : > { %1853 = vmatpush.msrb.mxu2 %v1844_v41 }
 0x367   : > { %1854 = vmatpush.msrb.mxu2 %v1843_v42 }
 0x369   : > { %1855 = vmatpush.msrb.mxu2 %v1842_v43 }
 0x36b   : > { %1856 = vmatpush.msrb.mxu2 %v1841_v44 }
 0x36d   : > { %1857 = vmatpush.msrb.mxu2 %v1840_v45 }
 0x36f   : > { %1858 = vmatpush.msrb.mxu2 %v1839_v54 }
 0x371   : > { %1859 = vmatpush.msrb.mxu2 %v1838_v55 }
 0x373   : > { %1860 = vmatpush.msrb.mxu2 %v1837_v56 }
 0x375   : > { %1861 = vmatpush.msrb.mxu2 %v1836_v57 }
 0x377   : > { %1862 = vmatpush.msrb.mxu2 %v1835_v58 }
 0x379   : > { %1863 = vmatpush.msrb.mxu2 %v1834_v59 }
 0x37b   : > { %1864 = vmatpush.msrb.mxu2 %v1833_v60 }
 0x37d   : > { %1865 = vmatpush.msrb.mxu2 %v1832_v62 }
 0x37f   : > { %1866 = vmatpush.msrb.mxu2 %v1831_v0 }
 0x3c9   : > { %v1625_v46 = vpop.f32.mrf.mxu0 }
 0x3e5   : > { %v1645_v47 = vpop.f32.mrf.mxu2 }
 0x3e6   : > { %v1646_v48 = vadd.f32 %v1645_v47, %v1625_v46 }
 0x3e8   : > { %1649 = vst.msk [vmem:[#allocation3] sm:$0x1f] %vm1648_vm8, %v1646_v48 }
 0x3ef   : > { %v1650_v49 = vld [vmem:[#allocation3] sm:$0x1]  ;;  %v1661_v50 = vld [vmem:[#allocation3 + $0x1] sm:$0x1]  ;;  %v1720_v51 = vld [vmem:[#allocation3 + $0x2] sm:$0x1] }
 0x3f0   : > { %2199 = vmatmul.msk.f32.vlgmr.msrb.gmra.mxu3 %vm1673_vm9, %v1650_v49  ;;  %2198 = vmatmul.msk.f32.vlgmr.msrb.gmra.mxu1 %vm1673_vm9, %v1661_v50  ;;  %v1792_v52 = vld [vmem:[#allocation3 + $0x4] sm:$0x1]  ;;  %v1756_v53 = vld [vmem:[#allocation3 + $0x3] sm:$0x1] }
 0x3f1   : > { %2210 = vmatmul.msk.f32.vlgmr.msra.gmra.mxu2 %vm1673_vm9, %v1720_v51 }
 0x3f8   : > { %2232 = vmatmul.msk.f32.vlgmr.msra.gmra.mxu3 %vm1673_vm9, %v1792_v52  ;;  %2221 = vmatmul.msk.f32.vlgmr.msra.gmra.mxu1 %vm1673_vm9, %v1756_v53 }
 0x46d   : > { %v1694_v9 = vpop.f32.mrf.mxu1 }
 0x473   : > { %v1717_v10 = vpop.f32.mrf.mxu3 }
 0x474   : > { %v1718_v61 = vadd.f32 %v1717_v10, %v1694_v9  ;;  %v1752_v4 = vpop.f32.mrf.mxu2 }
 0x475   : > { %v1788_v13 = vpop.f32.mrf.mxu1 }
 0x476   : > { %v1755_v12 = vadd.f32 %v1752_v4, %v1718_v61 }
 0x478   : > { %v1791_v14 = vadd.f32 %v1788_v13, %v1755_v12 }
 0x47b   : > { %v1824_v15 = vpop.f32.mrf.mxu3 }
 0x47c   : > { %v1827_v16 = vadd.f32 %v1824_v15, %v1791_v14 }
 0x47e   : > { %v1829_v17 = vadd.f32 %v1828_v11, %v1827_v16 }
 0x480   : > { %v1830_v18 = vmax.f32 %v1829_v17, 0.0 }
 0x482   : > { %2233 = vmatmul.msk.f32.vlgmr.msrb.gmra.mxu2 %vm1847_vm10, %v1830_v18 }
 0x505   : > { %v1868_v24 = vpop.f32.mrf.mxu2 }
 0x506   : > { %v1869_v25 = vadd.f32 %v1868_v24, %v1846_v23 }
 0x508   : > { %v1871_v27 = vmax.f32 %v1869_v25, 0.0 }
 0x50a   : > { %2235 = vmatmul.msk.f32.vlgmr.msrb.gmra.mxu0 %vm1089_vm4, %v1871_v27 }
 0x587   : > { %v1907_v28 = vpop.f32.mrf.mxu0 }
 0x588   : > { %v1908_v29 = vadd.f32 %v1907_v28, %v1883_v20 }
 0x58a   : > { %1910 = vst [vmem:[%s486_s21] sm:$0x1] %v1908_v29 }
 0x58b   : > { %2309 = shalt.err (!%p2306_p3)
}
 0x58c   : > { %2243 = dma.vmem_to_hbm [thread:$0]  (%p2464_p5), %s1923_s17, 16, %s1925_s23, %s1912_s25  }
 0x58d PF: > { %s3491_s29 = sld [smem:[#allocation9_spill]] }
 0x58e   : > { %s3492_s30 = sld [smem:[#allocation7_spill]] }
 0x593   : > { %p2249_p4 = scmp.ge.s32.totalorder %s3491_s29, 2 }
 0x594   : > { %s1936_s0 = sand.u32 1, %s3492_s30  }
 0x595   : > { %p2246_p7 = pnand %p2249_p4, %p2468_p6  ;;  %s1937_s22 = scalar_lea.sflag [#allocation5], %s1936_s0 }
 0x597   : > { %p2247_p8 = pneg %p2246_p7 }
 0x599   : > { %2327 = dma.done.wait (%p2247_p8), %s1937_s22, 16  }
 0x59a   : > { %2329 = vsyncadd (%p2247_p8), %s1937_s22, 4294967280  ;;  %s3494_s21 = sld [smem:[#allocation10_spill]]  ;;  %s3497_s18 = smov %s2336_s19 }
 0x59b   : > { %s3495_s26 = sld [smem:[#allocation8_spill]] }
 0x59c   : > { %s3496_s20 = sld [smem:[#allocation11_spill]] }
 0x5a0   : > { %p25_p9 = scmp.ge.s32.totalorder %s3494_s21, 4  }
 0x5a1   : > { %s3498_s19 = smov %s3495_s26 }
 0x5a2   :  { %27 = sbr.rel (!%p25_p9) target bundleno = 5 (0x5), region = 127 }
 0x5a7   :  { %1942 = vsyncpa [#allocation5], 1 }
 0x5a8   :  { %1944 = vsyncpa [#allocation5 + $0x1], 1 }

</bundles_post_ra>
